<compile_context>
chip_gen: v5e
topology: v5e:2x2
jax: 0.10.0
libtpu: 0.0.40
codegen_flags: <defaults>
</compile_context>

<pallas_src>
import math
import functools

import jax
import jax.numpy as jnp
import numpy as np
from jax import lax
from jax.experimental import pallas as pl
from jax.experimental.pallas import tpu as pltpu


# ----------------------------------------------------------------------------
# Alibi slopes (same formula as x-transformers / mockmt3 AlibiPositionalBias)
# ----------------------------------------------------------------------------
def alibi_slopes(heads: int):
    def slopes_power_of_2(n):
        start = 2.0 ** (-(2.0 ** -(math.log2(n) - 3)))
        return [start * (start ** i) for i in range(n)]

    if math.log2(heads).is_integer():
        return slopes_power_of_2(heads)
    closest = 2 ** math.floor(math.log2(heads))
    return (slopes_power_of_2(closest)
            + alibi_slopes(2 * closest)[0::2][: heads - closest])


# ----------------------------------------------------------------------------
# Fused kernel: LayerNorm -> fused QKV -> per-head alibi attention
#               -> single output dense -> query residual
# One grid step processes `block_b` batch elements.
# ----------------------------------------------------------------------------
def _attn_kernel(h_ref, ln_g_ref, ln_b_ref, wqkv_ref, bqkv_ref,
                 wo_ref, bo_ref, dist_ref, slopes_ref, out_ref,
                 qkv_ref, ctx_ref,
                 *, num_heads, qk, v_ch, dqk, dv, eps):
    TB, S, D = h_ref.shape

    # ---- LayerNorm1 (layernorm2 is Identity for self-attention), f32 ----
    x = h_ref[...].reshape(TB * S, D)                     # leading merge: free
    mean = jnp.mean(x, axis=-1, keepdims=True)
    var = jnp.mean(jnp.square(x - mean), axis=-1, keepdims=True)
    xn = (x - mean) * lax.rsqrt(var + eps)
    xn = xn * ln_g_ref[0] + ln_b_ref[0]

    # ---- Fused Q|K|V projection: one full-width MXU pass, bf16 operands ----
    qkv = jnp.dot(xn.astype(jnp.bfloat16), wqkv_ref[...],
                  preferred_element_type=jnp.float32) + bqkv_ref[0]
    # Park the fused result in VMEM scratch (bf16): per-head slices below are
    # cheap lane selects and nothing large stays live in vregs across heads.
    qkv_ref[...] = qkv.reshape(TB, S, 2 * qk + v_ch).astype(jnp.bfloat16)

    # ---- Per-head alibi attention; contexts concatenated lane-wise ----------
    for h in range(num_heads):                            # static, small H
        q3 = qkv_ref[:, :, h * dqk:(h + 1) * dqk]         # already * 1/sqrt(dqk)
        k3 = qkv_ref[:, :, qk + h * dqk: qk + (h + 1) * dqk]
        v3 = qkv_ref[:, :, 2 * qk + h * dv: 2 * qk + (h + 1) * dv]

        # scores = (q/sqrt(d)).k + (slope/sqrt(d)) * (-|j-i|)  (same math as
        # the reference "bias then scale"; scale folded into Wq/bq/slope).
        scores = jnp.einsum("bqd,bkd->bqk", q3, k3,
                            preferred_element_type=jnp.float32)
        scores = scores + dist_ref[...] * slopes_ref[h]   # const ref, SMEM slope

        # Stable softmax with deferred normalization (EUP reciprocal).
        m = jnp.max(scores, axis=-1, keepdims=True)
        e = jnp.exp(scores - m)
        denom = jnp.sum(e, axis=-1, keepdims=True)
        ctx = jnp.einsum("bqk,bkd->bqd", e.astype(jnp.bfloat16), v3,
                         preferred_element_type=jnp.float32)
        ctx = ctx * pl.reciprocal(denom, approx=True)

        # Lane-wise concat into scratch (masked store is far cheaper than an
        # underfilled K=dv MXU pass per head).
        ctx_ref[:, :, h * dv:(h + 1) * dv] = ctx.astype(jnp.bfloat16)

    # ---- Single output projection over full V, bias, query residual --------
    proj = jnp.dot(ctx_ref[...].reshape(TB * S, v_ch), wo_ref[...],
                   preferred_element_type=jnp.float32)
    resid = h_ref[...].reshape(TB * S, D)                 # re-read: not live above
    out_ref[...] = (proj + bo_ref[0] + resid).reshape(TB, S, D)


def perceiver_alibi_attention(hidden, params, *, num_heads, eps=1e-12,
                              block_b=None):
    """hidden: (B, S, D) f32; params: dict of f32 weights; returns (B, S, D)."""
    B, S, D = hidden.shape
    H = num_heads
    QK = params["wq"].shape[1]
    V = params["wv"].shape[1]
    assert QK % H == 0 and V % H == 0
    dqk, dv = QK // H, V // H
    F = 2 * QK + V
    inv_sqrt_d = 1.0 / math.sqrt(dqk)

    # Amortize per-grid-step overhead, but keep >=2 grid steps so v7x's second
    # TensorCore gets work (grid axis is "parallel").
    if block_b is None:
        block_b = 1
        if S % 8 == 0:                  # keep (TB*S, d) <-> (TB, S, d) free
            max_bb = max(1, B // 2)
            for cand in (8, 4, 2):
                if cand <= max_bb and B % cand == 0:
                    block_b = cand
                    break
    assert B % block_b == 0

    f32, bf16 = jnp.float32, jnp.bfloat16

    # Fused QKV weights (1/sqrt(dqk) folded into Wq, bq and the slopes).
    # TODO(synk): pad D and F toward multiples of 256 for v6e/v7x MXU width at
    #             production channel counts.
    wqkv = jnp.concatenate(
        [params["wq"] * inv_sqrt_d, params["wk"], params["wv"]], axis=1
    ).astype(bf16)                                              # (D, F)
    bqkv = jnp.concatenate(
        [params["bq"].reshape(QK) * inv_sqrt_d,
         params["bk"].reshape(QK),
         params["bv"].reshape(V)]
    ).reshape(1, F).astype(f32)
    wo = params["wo"].astype(bf16)                              # (V, D)
    bo = params["bo"].reshape(1, D).astype(f32)
    ln_g = params["ln_g"].reshape(1, D).astype(f32)
    ln_b = params["ln_b"].reshape(1, D).astype(f32)
    slopes = (params["slopes"].reshape(H) * inv_sqrt_d).astype(f32)

    # Alibi distance -|j - i| precomputed host-side (constant (S, S) input).
    idx = jnp.arange(S, dtype=f32)
    dist = -jnp.abs(idx[None, :] - idx[:, None])

    kernel = functools.partial(_attn_kernel, num_heads=H, qk=QK, v_ch=V,
                               dqk=dqk, dv=dv, eps=eps)

    # Explicit VMEM budget (bytes), 2x headroom, clamped to v7x's 64 MiB.
    est = (4 * block_b * S * D * 4            # hidden + out, double-buffered
           + D * F * 2 + F * 4                # fused QKV weight / bias
           + V * D * 2 + D * 4 + 2 * D * 4    # Wo, bo, LN params
           + S * S * 4                        # alibi distance
           + block_b * S * (F + V) * 2        # bf16 qkv / ctx scratch
           + 2 * block_b * S * S * 4)         # scores / exp live values
    vmem_limit = int(min(max(2 * est, 32 << 20), 64 << 20))

    def build(single_buffer_consts):
        def const_spec(shape):
            imap = lambda b: (0,) * len(shape)
            if single_buffer_consts:
                # Constant index_map -> fetched once; single buffer saves VMEM
                # (matters most inside v7x's 64 MiB).
                return pl.BlockSpec(shape, imap, pipeline_mode=pl.Buffered(1))
            return pl.BlockSpec(shape, imap)

        return pl.pallas_call(
            kernel,
            out_shape=jax.ShapeDtypeStruct((B, S, D), jnp.float32),
            grid=(B // block_b,),
            in_specs=[
                pl.BlockSpec((block_b, S, D), lambda b: (b, 0, 0)),  # hidden
                const_spec((1, D)), const_spec((1, D)),              # LN gamma/beta
                const_spec((D, F)), const_spec((1, F)),              # fused Wqkv, bqkv
                const_spec((V, D)), const_spec((1, D)),              # Wo, bo
                const_spec((S, S)),                                  # alibi distance
                pl.BlockSpec(memory_space=pltpu.MemorySpace.SMEM),   # alibi slopes
            ],
            out_specs=pl.BlockSpec((block_b, S, D), lambda b: (b, 0, 0)),
            scratch_shapes=[
                pltpu.VMEM((block_b, S, F), bf16),   # fused QKV result
                pltpu.VMEM((block_b, S, V), bf16),   # lane-concatenated contexts
            ],
            compiler_params=pltpu.CompilerParams(
                dimension_semantics=("parallel",),
                vmem_limit_bytes=vmem_limit),
        )

    args = (hidden, ln_g, ln_b, wqkv, bqkv, wo, bo, dist, slopes)
    try:
        return build(True)(*args)
    except Exception:
        # pipeline_mode=pl.Buffered(1) rejected on this jax/TPU combo: fall
        # back to default double-buffered constant specs (same semantics).
        return build(False)(*args)


# ----------------------------------------------------------------------------
# Pure-JAX f32 reference (mirrors the PyTorch forward exactly) for validation.
# ----------------------------------------------------------------------------
def reference(hidden, params, *, num_heads, eps=1e-12):
    B, S, D = hidden.shape
    QK = params["wq"].shape[1]
    V = params["wv"].shape[1]
    dqk, dv = QK // num_heads, V // num_heads

    mean = jnp.mean(hidden, -1, keepdims=True)
    var = jnp.mean((hidden - mean) ** 2, -1, keepdims=True)
    xn = (hidden - mean) / jnp.sqrt(var + eps) * params["ln_g"][0] + params["ln_b"][0]

    q = xn @ params["wq"] + params["bq"][0]
    k = xn @ params["wk"] + params["bk"][0]
    v = xn @ params["wv"] + params["bv"][0]

    def split(x, d):
        return x.reshape(B, S, num_heads, d).transpose(0, 2, 1, 3)

    q, k, v = split(q, dqk), split(k, dqk), split(v, dv)
    scores = jnp.einsum("bhqd,bhkd->bhqk", q, k)

    i_idx = jnp.arange(S)[:, None].astype(jnp.float32)
    j_idx = jnp.arange(S)[None, :].astype(jnp.float32)
    bias = -jnp.abs(j_idx - i_idx)[None] * params["slopes"][0][:, None, None]
    scores = scores + bias[None]
    scores = scores / math.sqrt(dqk)
    probs = jax.nn.softmax(scores, axis=-1)
    ctx = jnp.einsum("bhqk,bhkd->bhqd", probs, v)
    ctx = ctx.transpose(0, 2, 1, 3).reshape(B, S, V)
    out = ctx @ params["wo"] + params["bo"][0]
    return out + hidden


# ----------------------------------------------------------------------------
if __name__ == "__main__":
    B, S, D, H = 2, 8, 32, 4           # q_dim = qk_channels = v_channels = 32
    QK = D
    V = D

    key = jax.random.PRNGKey(0)
    ks = jax.random.split(key, 12)
    init = lambda k, shape, s=0.05: (s * jax.random.normal(k, shape)).astype(jnp.float32)

    params = dict(
        ln_g=jnp.ones((1, D), jnp.float32),
        ln_b=jnp.zeros((1, D), jnp.float32),
        wq=init(ks[0], (D, QK)), bq=init(ks[1], (1, QK)),
        wk=init(ks[2], (D, QK)), bk=init(ks[3], (1, QK)),
        wv=init(ks[4], (D, V)),  bv=init(ks[5], (1, V)),
        wo=init(ks[6], (V, D)),  bo=init(ks[7], (1, D)),
        slopes=jnp.asarray(alibi_slopes(H), jnp.float32)[None, :],
    )

    hidden = jax.random.normal(ks[8], (B, S, D), jnp.float32)

    out = perceiver_alibi_attention(hidden, params, num_heads=H)
    out = jax.block_until_ready(out)

    ref = reference(hidden, params, num_heads=H)
    # bf16 matmul operands + EUP approx reciprocal => slightly looser tolerance
    np.testing.assert_allclose(np.asarray(out), np.asarray(ref),
                               rtol=2e-2, atol=2e-2)

    print("KERNEL_OK")
</pallas_src>

<mosaic_0001>
module attributes {stable_mosaic.version = 11 : i64} {
  func.func @_attn_kernel(%arg0: i32, %arg1: memref<1x8x32xf32, #tpu.memory_space<vmem>>, %arg2: memref<1x32xf32, #tpu.memory_space<vmem>>, %arg3: memref<1x32xf32, #tpu.memory_space<vmem>>, %arg4: memref<32x96xbf16, #tpu.memory_space<vmem>>, %arg5: memref<1x96xf32, #tpu.memory_space<vmem>>, %arg6: memref<32x32xbf16, #tpu.memory_space<vmem>>, %arg7: memref<1x32xf32, #tpu.memory_space<vmem>>, %arg8: memref<8x8xf32, #tpu.memory_space<vmem>>, %arg9: memref<4xf32, #tpu.memory_space<smem>>, %arg10: memref<1x8x32xf32, #tpu.memory_space<vmem>>, %arg11: memref<1x8x96xbf16, #tpu.memory_space<vmem>>, %arg12: memref<1x8x32xbf16, #tpu.memory_space<vmem>>) attributes {dimension_semantics = [#tpu.dimension_semantics<parallel>], iteration_bounds = array<i64: 2>, scalar_prefetch = 0 : i64, scratch_operands = 2 : i64, tpu.core_type = #tpu.core_type<tc>, window_params = [{transform_indices = @transform_0, window_bounds = array<i64: 1, 8, 32>}, {pipeline_mode = #tpu.pipeline_mode<synchronous>, transform_indices = @transform_1, window_bounds = array<i64: 1, 32>}, {pipeline_mode = #tpu.pipeline_mode<synchronous>, transform_indices = @transform_2, window_bounds = array<i64: 1, 32>}, {pipeline_mode = #tpu.pipeline_mode<synchronous>, transform_indices = @transform_3, window_bounds = array<i64: 32, 96>}, {pipeline_mode = #tpu.pipeline_mode<synchronous>, transform_indices = @transform_4, window_bounds = array<i64: 1, 96>}, {pipeline_mode = #tpu.pipeline_mode<synchronous>, transform_indices = @transform_5, window_bounds = array<i64: 32, 32>}, {pipeline_mode = #tpu.pipeline_mode<synchronous>, transform_indices = @transform_6, window_bounds = array<i64: 1, 32>}, {pipeline_mode = #tpu.pipeline_mode<synchronous>, transform_indices = @transform_7, window_bounds = array<i64: 8, 8>}, {transform_indices = @transform_8, window_bounds = array<i64: 4>}, {transform_indices = @transform_9, window_bounds = array<i64: 1, 8, 32>}]} {
    %c0 = arith.constant 0 : index
    %c0_0 = arith.constant 0 : index
    %c0_1 = arith.constant 0 : index
    %0 = vector.load %arg1[%c0, %c0_0, %c0_1] : memref<1x8x32xf32, #tpu.memory_space<vmem>>, vector<1x8x32xf32>
    %1 = vector.shape_cast %0 : vector<1x8x32xf32> to vector<8x32xf32>
    %cst = arith.constant dense<0.000000e+00> : vector<8xf32>
    %2 = vector.multi_reduction <add>, %1, %cst [1] : vector<8x32xf32> to vector<8xf32>
    %3 = vector.shape_cast %2 : vector<8xf32> to vector<8x1xf32>
    %cst_2 = arith.constant 3.200000e+01 : f32
    %4 = vector.broadcast %cst_2 : f32 to vector<8x1xf32>
    %5 = arith.divf %3, %4 : vector<8x1xf32>
    %6 = vector.broadcast %5 : vector<8x1xf32> to vector<8x32xf32>
    %7 = arith.subf %1, %6 : vector<8x32xf32>
    %8 = arith.mulf %7, %7 : vector<8x32xf32>
    %cst_3 = arith.constant dense<0.000000e+00> : vector<8xf32>
    %9 = vector.multi_reduction <add>, %8, %cst_3 [1] : vector<8x32xf32> to vector<8xf32>
    %10 = vector.shape_cast %9 : vector<8xf32> to vector<8x1xf32>
    %cst_4 = arith.constant 3.200000e+01 : f32
    %11 = vector.broadcast %cst_4 : f32 to vector<8x1xf32>
    %12 = arith.divf %10, %11 : vector<8x1xf32>
    %13 = vector.broadcast %5 : vector<8x1xf32> to vector<8x32xf32>
    %14 = arith.subf %1, %13 : vector<8x32xf32>
    %cst_5 = arith.constant 9.99999996E-13 : f32
    %15 = vector.broadcast %cst_5 : f32 to vector<8x1xf32>
    %16 = arith.addf %12, %15 : vector<8x1xf32>
    %17 = math.rsqrt %16 : vector<8x1xf32>
    %18 = vector.broadcast %17 : vector<8x1xf32> to vector<8x32xf32>
    %19 = arith.mulf %14, %18 : vector<8x32xf32>
    %c0_6 = arith.constant 0 : index
    %c0_7 = arith.constant 0 : index
    %20 = vector.load %arg2[%c0_6, %c0_7] : memref<1x32xf32, #tpu.memory_space<vmem>>, vector<1x32xf32>
    %21 = vector.shape_cast %20 : vector<1x32xf32> to vector<32xf32>
    %22 = vector.shape_cast %21 : vector<32xf32> to vector<1x32xf32>
    %23 = vector.broadcast %22 : vector<1x32xf32> to vector<8x32xf32>
    %24 = arith.mulf %19, %23 : vector<8x32xf32>
    %c0_8 = arith.constant 0 : index
    %c0_9 = arith.constant 0 : index
    %25 = vector.load %arg3[%c0_8, %c0_9] : memref<1x32xf32, #tpu.memory_space<vmem>>, vector<1x32xf32>
    %26 = vector.shape_cast %25 : vector<1x32xf32> to vector<32xf32>
    %27 = vector.shape_cast %26 : vector<32xf32> to vector<1x32xf32>
    %28 = vector.broadcast %27 : vector<1x32xf32> to vector<8x32xf32>
    %29 = arith.addf %24, %28 : vector<8x32xf32>
    %30 = arith.truncf %29 : vector<8x32xf32> to vector<8x32xbf16>
    %c0_10 = arith.constant 0 : index
    %c0_11 = arith.constant 0 : index
    %31 = vector.load %arg4[%c0_10, %c0_11] : memref<32x96xbf16, #tpu.memory_space<vmem>>, vector<32x96xbf16>
    %cst_12 = arith.constant dense<0.000000e+00> : vector<8x96xf32>
    %32 = tpu.matmul %30, %31, %cst_12 {dimension_numbers = #tpu.dot_dimension_numbers<[1], [0], [0], [1], [0, 0, 1, 1], [], []>} : vector<8x32xbf16>, vector<32x96xbf16>, vector<8x96xf32> -> vector<8x96xf32>
    %c0_13 = arith.constant 0 : index
    %c0_14 = arith.constant 0 : index
    %33 = vector.load %arg5[%c0_13, %c0_14] : memref<1x96xf32, #tpu.memory_space<vmem>>, vector<1x96xf32>
    %34 = vector.shape_cast %33 : vector<1x96xf32> to vector<96xf32>
    %35 = vector.shape_cast %34 : vector<96xf32> to vector<1x96xf32>
    %36 = vector.broadcast %35 : vector<1x96xf32> to vector<8x96xf32>
    %37 = arith.addf %32, %36 : vector<8x96xf32>
    %38 = vector.shape_cast %37 : vector<8x96xf32> to vector<1x8x96xf32>
    %39 = arith.truncf %38 : vector<1x8x96xf32> to vector<1x8x96xbf16>
    %c0_15 = arith.constant 0 : index
    %c0_16 = arith.constant 0 : index
    %c0_17 = arith.constant 0 : index
    %40 = vector.load %arg11[%c0_15, %c0_16, %c0_17] : memref<1x8x96xbf16, #tpu.memory_space<vmem>>, vector<1x8x96xbf16>
    tpu.vector_store %arg11[%c0_15, %c0_16, %c0_17], %39 {strides = array<i32>} : memref<1x8x96xbf16, #tpu.memory_space<vmem>>, vector<1x8x96xbf16>,
    %c0_18 = arith.constant 0 : index
    %c0_19 = arith.constant 0 : index
    %c0_20 = arith.constant 0 : index
    %41 = vector.load %arg11[%c0_18, %c0_19, %c0_20] : memref<1x8x96xbf16, #tpu.memory_space<vmem>>, vector<1x8x8xbf16>
    %c0_21 = arith.constant 0 : index
    %c0_22 = arith.constant 0 : index
    %c32 = arith.constant 32 : index
    %42 = vector.load %arg11[%c0_21, %c0_22, %c32] : memref<1x8x96xbf16, #tpu.memory_space<vmem>>, vector<1x8x8xbf16>
    %c0_23 = arith.constant 0 : index
    %c0_24 = arith.constant 0 : index
    %c64 = arith.constant 64 : index
    %43 = vector.load %arg11[%c0_23, %c0_24, %c64] : memref<1x8x96xbf16, #tpu.memory_space<vmem>>, vector<1x8x8xbf16>
    "tpu.trace_start"() <{level = 10 : i32, message = "bqd,bkd->bqk"}> : () -> ()
    %cst_25 = arith.constant dense<0.000000e+00> : vector<1x8x8xf32>
    %44 = tpu.matmul %41, %42, %cst_25 {dimension_numbers = #tpu.dot_dimension_numbers<[2], [2], [1], [1], [0, 0, 0, 1, 1, 1], [0], [0]>} : vector<1x8x8xbf16>, vector<1x8x8xbf16>, vector<1x8x8xf32> -> vector<1x8x8xf32>
    "tpu.trace_stop"() : () -> ()
    %c0_26 = arith.constant 0 : index
    %c0_27 = arith.constant 0 : index
    %45 = vector.load %arg8[%c0_26, %c0_27] : memref<8x8xf32, #tpu.memory_space<vmem>>, vector<8x8xf32>
    %c0_28 = arith.constant 0 : index
    %46 = memref.load %arg9[%c0_28] : memref<4xf32, #tpu.memory_space<smem>>
    %47 = vector.broadcast %46 : f32 to vector<8x8xf32>
    %48 = arith.mulf %45, %47 : vector<8x8xf32>
    %49 = vector.shape_cast %48 : vector<8x8xf32> to vector<1x8x8xf32>
    %50 = arith.addf %44, %49 : vector<1x8x8xf32>
    %cst_29 = arith.constant dense<0xFF800000> : vector<1x8xf32>
    %51 = vector.multi_reduction <maximumf>, %50, %cst_29 [2] : vector<1x8x8xf32> to vector<1x8xf32>
    %52 = vector.shape_cast %51 : vector<1x8xf32> to vector<1x8x1xf32>
    %53 = vector.broadcast %52 : vector<1x8x1xf32> to vector<1x8x8xf32>
    %54 = arith.subf %50, %53 : vector<1x8x8xf32>
    %55 = math.exp %54 : vector<1x8x8xf32>
    %cst_30 = arith.constant dense<0.000000e+00> : vector<1x8xf32>
    %56 = vector.multi_reduction <add>, %55, %cst_30 [2] : vector<1x8x8xf32> to vector<1x8xf32>
    %57 = vector.shape_cast %56 : vector<1x8xf32> to vector<1x8x1xf32>
    %58 = arith.truncf %55 : vector<1x8x8xf32> to vector<1x8x8xbf16>
    "tpu.trace_start"() <{level = 10 : i32, message = "bqk,bkd->bqd"}> : () -> ()
    %cst_31 = arith.constant dense<0.000000e+00> : vector<1x8x8xf32>
    %59 = tpu.matmul %58, %43, %cst_31 {dimension_numbers = #tpu.dot_dimension_numbers<[2], [1], [1], [2], [0, 0, 0, 1, 1, 2], [0], [0]>} : vector<1x8x8xbf16>, vector<1x8x8xbf16>, vector<1x8x8xf32> -> vector<1x8x8xf32>
    "tpu.trace_stop"() : () -> ()
    %60 = tpu.reciprocal %57 {approx = true} : vector<1x8x1xf32> -> vector<1x8x1xf32>
    %61 = vector.broadcast %60 : vector<1x8x1xf32> to vector<1x8x8xf32>
    %62 = arith.mulf %59, %61 : vector<1x8x8xf32>
    %63 = arith.truncf %62 : vector<1x8x8xf32> to vector<1x8x8xbf16>
    %c0_32 = arith.constant 0 : index
    %c0_33 = arith.constant 0 : index
    %c0_34 = arith.constant 0 : index
    %64 = vector.load %arg12[%c0_32, %c0_33, %c0_34] : memref<1x8x32xbf16, #tpu.memory_space<vmem>>, vector<1x8x8xbf16>
    tpu.vector_store %arg12[%c0_32, %c0_33, %c0_34], %63 {strides = array<i32>} : memref<1x8x32xbf16, #tpu.memory_space<vmem>>, vector<1x8x8xbf16>,
    %c0_35 = arith.constant 0 : index
    %c0_36 = arith.constant 0 : index
    %c8 = arith.constant 8 : index
    %65 = vector.load %arg11[%c0_35, %c0_36, %c8] : memref<1x8x96xbf16, #tpu.memory_space<vmem>>, vector<1x8x8xbf16>
    %c0_37 = arith.constant 0 : index
    %c0_38 = arith.constant 0 : index
    %c40 = arith.constant 40 : index
    %66 = vector.load %arg11[%c0_37, %c0_38, %c40] : memref<1x8x96xbf16, #tpu.memory_space<vmem>>, vector<1x8x8xbf16>
    %c0_39 = arith.constant 0 : index
    %c0_40 = arith.constant 0 : index
    %c72 = arith.constant 72 : index
    %67 = vector.load %arg11[%c0_39, %c0_40, %c72] : memref<1x8x96xbf16, #tpu.memory_space<vmem>>, vector<1x8x8xbf16>
    "tpu.trace_start"() <{level = 10 : i32, message = "bqd,bkd->bqk"}> : () -> ()
    %cst_41 = arith.constant dense<0.000000e+00> : vector<1x8x8xf32>
    %68 = tpu.matmul %65, %66, %cst_41 {dimension_numbers = #tpu.dot_dimension_numbers<[2], [2], [1], [1], [0, 0, 0, 1, 1, 1], [0], [0]>} : vector<1x8x8xbf16>, vector<1x8x8xbf16>, vector<1x8x8xf32> -> vector<1x8x8xf32>
    "tpu.trace_stop"() : () -> ()
    %c0_42 = arith.constant 0 : index
    %c0_43 = arith.constant 0 : index
    %69 = vector.load %arg8[%c0_42, %c0_43] : memref<8x8xf32, #tpu.memory_space<vmem>>, vector<8x8xf32>
    %c1 = arith.constant 1 : index
    %70 = memref.load %arg9[%c1] : memref<4xf32, #tpu.memory_space<smem>>
    %71 = vector.broadcast %70 : f32 to vector<8x8xf32>
    %72 = arith.mulf %69, %71 : vector<8x8xf32>
    %73 = vector.shape_cast %72 : vector<8x8xf32> to vector<1x8x8xf32>
    %74 = arith.addf %68, %73 : vector<1x8x8xf32>
    %cst_44 = arith.constant dense<0xFF800000> : vector<1x8xf32>
    %75 = vector.multi_reduction <maximumf>, %74, %cst_44 [2] : vector<1x8x8xf32> to vector<1x8xf32>
    %76 = vector.shape_cast %75 : vector<1x8xf32> to vector<1x8x1xf32>
    %77 = vector.broadcast %76 : vector<1x8x1xf32> to vector<1x8x8xf32>
    %78 = arith.subf %74, %77 : vector<1x8x8xf32>
    %79 = math.exp %78 : vector<1x8x8xf32>
    %cst_45 = arith.constant dense<0.000000e+00> : vector<1x8xf32>
    %80 = vector.multi_reduction <add>, %79, %cst_45 [2] : vector<1x8x8xf32> to vector<1x8xf32>
    %81 = vector.shape_cast %80 : vector<1x8xf32> to vector<1x8x1xf32>
    %82 = arith.truncf %79 : vector<1x8x8xf32> to vector<1x8x8xbf16>
    "tpu.trace_start"() <{level = 10 : i32, message = "bqk,bkd->bqd"}> : () -> ()
    %cst_46 = arith.constant dense<0.000000e+00> : vector<1x8x8xf32>
    %83 = tpu.matmul %82, %67, %cst_46 {dimension_numbers = #tpu.dot_dimension_numbers<[2], [1], [1], [2], [0, 0, 0, 1, 1, 2], [0], [0]>} : vector<1x8x8xbf16>, vector<1x8x8xbf16>, vector<1x8x8xf32> -> vector<1x8x8xf32>
    "tpu.trace_stop"() : () -> ()
    %84 = tpu.reciprocal %81 {approx = true} : vector<1x8x1xf32> -> vector<1x8x1xf32>
    %85 = vector.broadcast %84 : vector<1x8x1xf32> to vector<1x8x8xf32>
    %86 = arith.mulf %83, %85 : vector<1x8x8xf32>
    %87 = arith.truncf %86 : vector<1x8x8xf32> to vector<1x8x8xbf16>
    %c0_47 = arith.constant 0 : index
    %c0_48 = arith.constant 0 : index
    %c8_49 = arith.constant 8 : index
    %88 = vector.load %arg12[%c0_47, %c0_48, %c8_49] : memref<1x8x32xbf16, #tpu.memory_space<vmem>>, vector<1x8x8xbf16>
    tpu.vector_store %arg12[%c0_47, %c0_48, %c8_49], %87 {strides = array<i32>} : memref<1x8x32xbf16, #tpu.memory_space<vmem>>, vector<1x8x8xbf16>,
    %c0_50 = arith.constant 0 : index
    %c0_51 = arith.constant 0 : index
    %c16 = arith.constant 16 : index
    %89 = vector.load %arg11[%c0_50, %c0_51, %c16] : memref<1x8x96xbf16, #tpu.memory_space<vmem>>, vector<1x8x8xbf16>
    %c0_52 = arith.constant 0 : index
    %c0_53 = arith.constant 0 : index
    %c48 = arith.constant 48 : index
    %90 = vector.load %arg11[%c0_52, %c0_53, %c48] : memref<1x8x96xbf16, #tpu.memory_space<vmem>>, vector<1x8x8xbf16>
    %c0_54 = arith.constant 0 : index
    %c0_55 = arith.constant 0 : index
    %c80 = arith.constant 80 : index
    %91 = vector.load %arg11[%c0_54, %c0_55, %c80] : memref<1x8x96xbf16, #tpu.memory_space<vmem>>, vector<1x8x8xbf16>
    "tpu.trace_start"() <{level = 10 : i32, message = "bqd,bkd->bqk"}> : () -> ()
    %cst_56 = arith.constant dense<0.000000e+00> : vector<1x8x8xf32>
    %92 = tpu.matmul %89, %90, %cst_56 {dimension_numbers = #tpu.dot_dimension_numbers<[2], [2], [1], [1], [0, 0, 0, 1, 1, 1], [0], [0]>} : vector<1x8x8xbf16>, vector<1x8x8xbf16>, vector<1x8x8xf32> -> vector<1x8x8xf32>
    "tpu.trace_stop"() : () -> ()
    %c0_57 = arith.constant 0 : index
    %c0_58 = arith.constant 0 : index
    %93 = vector.load %arg8[%c0_57, %c0_58] : memref<8x8xf32, #tpu.memory_space<vmem>>, vector<8x8xf32>
    %c2 = arith.constant 2 : index
    %94 = memref.load %arg9[%c2] : memref<4xf32, #tpu.memory_space<smem>>
    %95 = vector.broadcast %94 : f32 to vector<8x8xf32>
    %96 = arith.mulf %93, %95 : vector<8x8xf32>
    %97 = vector.shape_cast %96 : vector<8x8xf32> to vector<1x8x8xf32>
    %98 = arith.addf %92, %97 : vector<1x8x8xf32>
    %cst_59 = arith.constant dense<0xFF800000> : vector<1x8xf32>
    %99 = vector.multi_reduction <maximumf>, %98, %cst_59 [2] : vector<1x8x8xf32> to vector<1x8xf32>
    %100 = vector.shape_cast %99 : vector<1x8xf32> to vector<1x8x1xf32>
    %101 = vector.broadcast %100 : vector<1x8x1xf32> to vector<1x8x8xf32>
    %102 = arith.subf %98, %101 : vector<1x8x8xf32>
    %103 = math.exp %102 : vector<1x8x8xf32>
    %cst_60 = arith.constant dense<0.000000e+00> : vector<1x8xf32>
    %104 = vector.multi_reduction <add>, %103, %cst_60 [2] : vector<1x8x8xf32> to vector<1x8xf32>
    %105 = vector.shape_cast %104 : vector<1x8xf32> to vector<1x8x1xf32>
    %106 = arith.truncf %103 : vector<1x8x8xf32> to vector<1x8x8xbf16>
    "tpu.trace_start"() <{level = 10 : i32, message = "bqk,bkd->bqd"}> : () -> ()
    %cst_61 = arith.constant dense<0.000000e+00> : vector<1x8x8xf32>
    %107 = tpu.matmul %106, %91, %cst_61 {dimension_numbers = #tpu.dot_dimension_numbers<[2], [1], [1], [2], [0, 0, 0, 1, 1, 2], [0], [0]>} : vector<1x8x8xbf16>, vector<1x8x8xbf16>, vector<1x8x8xf32> -> vector<1x8x8xf32>
    "tpu.trace_stop"() : () -> ()
    %108 = tpu.reciprocal %105 {approx = true} : vector<1x8x1xf32> -> vector<1x8x1xf32>
    %109 = vector.broadcast %108 : vector<1x8x1xf32> to vector<1x8x8xf32>
    %110 = arith.mulf %107, %109 : vector<1x8x8xf32>
    %111 = arith.truncf %110 : vector<1x8x8xf32> to vector<1x8x8xbf16>
    %c0_62 = arith.constant 0 : index
    %c0_63 = arith.constant 0 : index
    %c16_64 = arith.constant 16 : index
    %112 = vector.load %arg12[%c0_62, %c0_63, %c16_64] : memref<1x8x32xbf16, #tpu.memory_space<vmem>>, vector<1x8x8xbf16>
    tpu.vector_store %arg12[%c0_62, %c0_63, %c16_64], %111 {strides = array<i32>} : memref<1x8x32xbf16, #tpu.memory_space<vmem>>, vector<1x8x8xbf16>,
    %c0_65 = arith.constant 0 : index
    %c0_66 = arith.constant 0 : index
    %c24 = arith.constant 24 : index
    %113 = vector.load %arg11[%c0_65, %c0_66, %c24] : memref<1x8x96xbf16, #tpu.memory_space<vmem>>, vector<1x8x8xbf16>
    %c0_67 = arith.constant 0 : index
    %c0_68 = arith.constant 0 : index
    %c56 = arith.constant 56 : index
    %114 = vector.load %arg11[%c0_67, %c0_68, %c56] : memref<1x8x96xbf16, #tpu.memory_space<vmem>>, vector<1x8x8xbf16>
    %c0_69 = arith.constant 0 : index
    %c0_70 = arith.constant 0 : index
    %c88 = arith.constant 88 : index
    %115 = vector.load %arg11[%c0_69, %c0_70, %c88] : memref<1x8x96xbf16, #tpu.memory_space<vmem>>, vector<1x8x8xbf16>
    "tpu.trace_start"() <{level = 10 : i32, message = "bqd,bkd->bqk"}> : () -> ()
    %cst_71 = arith.constant dense<0.000000e+00> : vector<1x8x8xf32>
    %116 = tpu.matmul %113, %114, %cst_71 {dimension_numbers = #tpu.dot_dimension_numbers<[2], [2], [1], [1], [0, 0, 0, 1, 1, 1], [0], [0]>} : vector<1x8x8xbf16>, vector<1x8x8xbf16>, vector<1x8x8xf32> -> vector<1x8x8xf32>
    "tpu.trace_stop"() : () -> ()
    %c0_72 = arith.constant 0 : index
    %c0_73 = arith.constant 0 : index
    %117 = vector.load %arg8[%c0_72, %c0_73] : memref<8x8xf32, #tpu.memory_space<vmem>>, vector<8x8xf32>
    %c3 = arith.constant 3 : index
    %118 = memref.load %arg9[%c3] : memref<4xf32, #tpu.memory_space<smem>>
    %119 = vector.broadcast %118 : f32 to vector<8x8xf32>
    %120 = arith.mulf %117, %119 : vector<8x8xf32>
    %121 = vector.shape_cast %120 : vector<8x8xf32> to vector<1x8x8xf32>
    %122 = arith.addf %116, %121 : vector<1x8x8xf32>
    %cst_74 = arith.constant dense<0xFF800000> : vector<1x8xf32>
    %123 = vector.multi_reduction <maximumf>, %122, %cst_74 [2] : vector<1x8x8xf32> to vector<1x8xf32>
    %124 = vector.shape_cast %123 : vector<1x8xf32> to vector<1x8x1xf32>
    %125 = vector.broadcast %124 : vector<1x8x1xf32> to vector<1x8x8xf32>
    %126 = arith.subf %122, %125 : vector<1x8x8xf32>
    %127 = math.exp %126 : vector<1x8x8xf32>
    %cst_75 = arith.constant dense<0.000000e+00> : vector<1x8xf32>
    %128 = vector.multi_reduction <add>, %127, %cst_75 [2] : vector<1x8x8xf32> to vector<1x8xf32>
    %129 = vector.shape_cast %128 : vector<1x8xf32> to vector<1x8x1xf32>
    %130 = arith.truncf %127 : vector<1x8x8xf32> to vector<1x8x8xbf16>
    "tpu.trace_start"() <{level = 10 : i32, message = "bqk,bkd->bqd"}> : () -> ()
    %cst_76 = arith.constant dense<0.000000e+00> : vector<1x8x8xf32>
    %131 = tpu.matmul %130, %115, %cst_76 {dimension_numbers = #tpu.dot_dimension_numbers<[2], [1], [1], [2], [0, 0, 0, 1, 1, 2], [0], [0]>} : vector<1x8x8xbf16>, vector<1x8x8xbf16>, vector<1x8x8xf32> -> vector<1x8x8xf32>
    "tpu.trace_stop"() : () -> ()
    %132 = tpu.reciprocal %129 {approx = true} : vector<1x8x1xf32> -> vector<1x8x1xf32>
    %133 = vector.broadcast %132 : vector<1x8x1xf32> to vector<1x8x8xf32>
    %134 = arith.mulf %131, %133 : vector<1x8x8xf32>
    %135 = arith.truncf %134 : vector<1x8x8xf32> to vector<1x8x8xbf16>
    %c0_77 = arith.constant 0 : index
    %c0_78 = arith.constant 0 : index
    %c24_79 = arith.constant 24 : index
    %136 = vector.load %arg12[%c0_77, %c0_78, %c24_79] : memref<1x8x32xbf16, #tpu.memory_space<vmem>>, vector<1x8x8xbf16>
    tpu.vector_store %arg12[%c0_77, %c0_78, %c24_79], %135 {strides = array<i32>} : memref<1x8x32xbf16, #tpu.memory_space<vmem>>, vector<1x8x8xbf16>,
    %c0_80 = arith.constant 0 : index
    %c0_81 = arith.constant 0 : index
    %c0_82 = arith.constant 0 : index
    %137 = vector.load %arg12[%c0_80, %c0_81, %c0_82] : memref<1x8x32xbf16, #tpu.memory_space<vmem>>, vector<1x8x32xbf16>
    %138 = vector.shape_cast %137 : vector<1x8x32xbf16> to vector<8x32xbf16>
    %c0_83 = arith.constant 0 : index
    %c0_84 = arith.constant 0 : index
    %139 = vector.load %arg6[%c0_83, %c0_84] : memref<32x32xbf16, #tpu.memory_space<vmem>>, vector<32x32xbf16>
    %cst_85 = arith.constant dense<0.000000e+00> : vector<8x32xf32>
    %140 = tpu.matmul %138, %139, %cst_85 {dimension_numbers = #tpu.dot_dimension_numbers<[1], [0], [0], [1], [0, 0, 1, 1], [], []>} : vector<8x32xbf16>, vector<32x32xbf16>, vector<8x32xf32> -> vector<8x32xf32>
    %c0_86 = arith.constant 0 : index
    %c0_87 = arith.constant 0 : index
    %c0_88 = arith.constant 0 : index
    %141 = vector.load %arg1[%c0_86, %c0_87, %c0_88] : memref<1x8x32xf32, #tpu.memory_space<vmem>>, vector<1x8x32xf32>
    %142 = vector.shape_cast %141 : vector<1x8x32xf32> to vector<8x32xf32>
    %c0_89 = arith.constant 0 : index
    %c0_90 = arith.constant 0 : index
    %143 = vector.load %arg7[%c0_89, %c0_90] : memref<1x32xf32, #tpu.memory_space<vmem>>, vector<1x32xf32>
    %144 = vector.shape_cast %143 : vector<1x32xf32> to vector<32xf32>
    %145 = vector.shape_cast %144 : vector<32xf32> to vector<1x32xf32>
    %146 = vector.broadcast %145 : vector<1x32xf32> to vector<8x32xf32>
    %147 = arith.addf %140, %146 : vector<8x32xf32>
    %148 = arith.addf %147, %142 : vector<8x32xf32>
    %149 = vector.shape_cast %148 : vector<8x32xf32> to vector<1x8x32xf32>
    %c0_91 = arith.constant 0 : index
    %c0_92 = arith.constant 0 : index
    %c0_93 = arith.constant 0 : index
    %150 = vector.load %arg10[%c0_91, %c0_92, %c0_93] : memref<1x8x32xf32, #tpu.memory_space<vmem>>, vector<1x8x32xf32>
    tpu.vector_store %arg10[%c0_91, %c0_92, %c0_93], %149 {strides = array<i32>} : memref<1x8x32xf32, #tpu.memory_space<vmem>>, vector<1x8x32xf32>,
    return
  }
  func.func @transform_0(%arg0: i32) -> (i32, i32, i32) {
    %c0_i32 = arith.constant 0 : i32
    %c0_i32_0 = arith.constant 0 : i32
    %c0_i32_1 = arith.constant 0 : i32
    return %arg0, %c0_i32, %c0_i32_0 : i32, i32, i32
  }
  func.func @transform_1(%arg0: i32) -> (i32, i32) {
    %c0_i32 = arith.constant 0 : i32
    %c0_i32_0 = arith.constant 0 : i32
    %c0_i32_1 = arith.constant 0 : i32
    return %c0_i32, %c0_i32_0 : i32, i32
  }
  func.func @transform_2(%arg0: i32) -> (i32, i32) {
    %c0_i32 = arith.constant 0 : i32
    %c0_i32_0 = arith.constant 0 : i32
    %c0_i32_1 = arith.constant 0 : i32
    return %c0_i32, %c0_i32_0 : i32, i32
  }
  func.func @transform_3(%arg0: i32) -> (i32, i32) {
    %c0_i32 = arith.constant 0 : i32
    %c0_i32_0 = arith.constant 0 : i32
    %c0_i32_1 = arith.constant 0 : i32
    return %c0_i32, %c0_i32_0 : i32, i32
  }
  func.func @transform_4(%arg0: i32) -> (i32, i32) {
    %c0_i32 = arith.constant 0 : i32
    %c0_i32_0 = arith.constant 0 : i32
    %c0_i32_1 = arith.constant 0 : i32
    return %c0_i32, %c0_i32_0 : i32, i32
  }
  func.func @transform_5(%arg0: i32) -> (i32, i32) {
    %c0_i32 = arith.constant 0 : i32
    %c0_i32_0 = arith.constant 0 : i32
    %c0_i32_1 = arith.constant 0 : i32
    return %c0_i32, %c0_i32_0 : i32, i32
  }
  func.func @transform_6(%arg0: i32) -> (i32, i32) {
    %c0_i32 = arith.constant 0 : i32
    %c0_i32_0 = arith.constant 0 : i32
    %c0_i32_1 = arith.constant 0 : i32
    return %c0_i32, %c0_i32_0 : i32, i32
  }
  func.func @transform_7(%arg0: i32) -> (i32, i32) {
    %c0_i32 = arith.constant 0 : i32
    %c0_i32_0 = arith.constant 0 : i32
    %c0_i32_1 = arith.constant 0 : i32
    return %c0_i32, %c0_i32_0 : i32, i32
  }
  func.func @transform_8(%arg0: i32) -> i32 {
    %c0_i32 = arith.constant 0 : i32
    %c0_i32_0 = arith.constant 0 : i32
    return %c0_i32 : i32
  }
  func.func @transform_9(%arg0: i32) -> (i32, i32, i32) {
    %c0_i32 = arith.constant 0 : i32
    %c0_i32_0 = arith.constant 0 : i32
    %c0_i32_1 = arith.constant 0 : i32
    return %arg0, %c0_i32, %c0_i32_0 : i32, i32, i32
  }
}

module attributes {stable_mosaic.version = 11 : i64} {
  func.func @_attn_kernel(%arg0: i32, %arg1: memref<1x8x32xf32, #tpu.memory_space<vmem>>, %arg2: memref<1x32xf32, #tpu.memory_space<vmem>>, %arg3: memref<1x32xf32, #tpu.memory_space<vmem>>, %arg4: memref<32x96xbf16, #tpu.memory_space<vmem>>, %arg5: memref<1x96xf32, #tpu.memory_space<vmem>>, %arg6: memref<32x32xbf16, #tpu.memory_space<vmem>>, %arg7: memref<1x32xf32, #tpu.memory_space<vmem>>, %arg8: memref<8x8xf32, #tpu.memory_space<vmem>>, %arg9: memref<4xf32, #tpu.memory_space<smem>>, %arg10: memref<1x8x32xf32, #tpu.memory_space<vmem>>, %arg11: memref<1x8x96xbf16, #tpu.memory_space<vmem>>, %arg12: memref<1x8x32xbf16, #tpu.memory_space<vmem>>) attributes {dimension_semantics = [#tpu.dimension_semantics<parallel>], iteration_bounds = array<i64: 2>, scalar_prefetch = 0 : i64, scratch_operands = 2 : i64, tpu.core_type = #tpu.core_type<tc>, window_params = [{transform_indices = @transform_0, window_bounds = array<i64: 1, 8, 32>}, {pipeline_mode = #tpu.pipeline_mode<synchronous>, transform_indices = @transform_1, window_bounds = array<i64: 1, 32>}, {pipeline_mode = #tpu.pipeline_mode<synchronous>, transform_indices = @transform_2, window_bounds = array<i64: 1, 32>}, {pipeline_mode = #tpu.pipeline_mode<synchronous>, transform_indices = @transform_3, window_bounds = array<i64: 32, 96>}, {pipeline_mode = #tpu.pipeline_mode<synchronous>, transform_indices = @transform_4, window_bounds = array<i64: 1, 96>}, {pipeline_mode = #tpu.pipeline_mode<synchronous>, transform_indices = @transform_5, window_bounds = array<i64: 32, 32>}, {pipeline_mode = #tpu.pipeline_mode<synchronous>, transform_indices = @transform_6, window_bounds = array<i64: 1, 32>}, {pipeline_mode = #tpu.pipeline_mode<synchronous>, transform_indices = @transform_7, window_bounds = array<i64: 8, 8>}, {transform_indices = @transform_8, window_bounds = array<i64: 4>}, {transform_indices = @transform_9, window_bounds = array<i64: 1, 8, 32>}]} {
    %c0 = arith.constant 0 : index
    %c0_0 = arith.constant 0 : index
    %c0_1 = arith.constant 0 : index
    %0 = vector.load %arg1[%c0, %c0_0, %c0_1] : memref<1x8x32xf32, #tpu.memory_space<vmem>>, vector<1x8x32xf32>
    %1 = vector.shape_cast %0 : vector<1x8x32xf32> to vector<8x32xf32>
    %cst = arith.constant dense<0.000000e+00> : vector<8xf32>
    %2 = vector.multi_reduction <add>, %1, %cst [1] : vector<8x32xf32> to vector<8xf32>
    %3 = vector.shape_cast %2 : vector<8xf32> to vector<8x1xf32>
    %cst_2 = arith.constant 3.200000e+01 : f32
    %4 = vector.broadcast %cst_2 : f32 to vector<8x1xf32>
    %5 = arith.divf %3, %4 : vector<8x1xf32>
    %6 = vector.broadcast %5 : vector<8x1xf32> to vector<8x32xf32>
    %7 = arith.subf %1, %6 : vector<8x32xf32>
    %8 = arith.mulf %7, %7 : vector<8x32xf32>
    %cst_3 = arith.constant dense<0.000000e+00> : vector<8xf32>
    %9 = vector.multi_reduction <add>, %8, %cst_3 [1] : vector<8x32xf32> to vector<8xf32>
    %10 = vector.shape_cast %9 : vector<8xf32> to vector<8x1xf32>
    %cst_4 = arith.constant 3.200000e+01 : f32
    %11 = vector.broadcast %cst_4 : f32 to vector<8x1xf32>
    %12 = arith.divf %10, %11 : vector<8x1xf32>
    %13 = vector.broadcast %5 : vector<8x1xf32> to vector<8x32xf32>
    %14 = arith.subf %1, %13 : vector<8x32xf32>
    %cst_5 = arith.constant 9.99999996E-13 : f32
    %15 = vector.broadcast %cst_5 : f32 to vector<8x1xf32>
    %16 = arith.addf %12, %15 : vector<8x1xf32>
    %17 = math.rsqrt %16 : vector<8x1xf32>
    %18 = vector.broadcast %17 : vector<8x1xf32> to vector<8x32xf32>
    %19 = arith.mulf %14, %18 : vector<8x32xf32>
    %c0_6 = arith.constant 0 : index
    %c0_7 = arith.constant 0 : index
    %20 = vector.load %arg2[%c0_6, %c0_7] : memref<1x32xf32, #tpu.memory_space<vmem>>, vector<1x32xf32>
    %21 = vector.shape_cast %20 : vector<1x32xf32> to vector<32xf32>
    %22 = vector.shape_cast %21 : vector<32xf32> to vector<1x32xf32>
    %23 = vector.broadcast %22 : vector<1x32xf32> to vector<8x32xf32>
    %24 = arith.mulf %19, %23 : vector<8x32xf32>
    %c0_8 = arith.constant 0 : index
    %c0_9 = arith.constant 0 : index
    %25 = vector.load %arg3[%c0_8, %c0_9] : memref<1x32xf32, #tpu.memory_space<vmem>>, vector<1x32xf32>
    %26 = vector.shape_cast %25 : vector<1x32xf32> to vector<32xf32>
    %27 = vector.shape_cast %26 : vector<32xf32> to vector<1x32xf32>
    %28 = vector.broadcast %27 : vector<1x32xf32> to vector<8x32xf32>
    %29 = arith.addf %24, %28 : vector<8x32xf32>
    %30 = arith.truncf %29 : vector<8x32xf32> to vector<8x32xbf16>
    %c0_10 = arith.constant 0 : index
    %c0_11 = arith.constant 0 : index
    %31 = vector.load %arg4[%c0_10, %c0_11] : memref<32x96xbf16, #tpu.memory_space<vmem>>, vector<32x96xbf16>
    %cst_12 = arith.constant dense<0.000000e+00> : vector<8x96xf32>
    %32 = tpu.matmul %30, %31, %cst_12 {dimension_numbers = #tpu.dot_dimension_numbers<[1], [0], [0], [1], [0, 0, 1, 1], [], []>} : vector<8x32xbf16>, vector<32x96xbf16>, vector<8x96xf32> -> vector<8x96xf32>
    %c0_13 = arith.constant 0 : index
    %c0_14 = arith.constant 0 : index
    %33 = vector.load %arg5[%c0_13, %c0_14] : memref<1x96xf32, #tpu.memory_space<vmem>>, vector<1x96xf32>
    %34 = vector.shape_cast %33 : vector<1x96xf32> to vector<96xf32>
    %35 = vector.shape_cast %34 : vector<96xf32> to vector<1x96xf32>
    %36 = vector.broadcast %35 : vector<1x96xf32> to vector<8x96xf32>
    %37 = arith.addf %32, %36 : vector<8x96xf32>
    %38 = vector.shape_cast %37 : vector<8x96xf32> to vector<1x8x96xf32>
    %39 = arith.truncf %38 : vector<1x8x96xf32> to vector<1x8x96xbf16>
    %c0_15 = arith.constant 0 : index
    %c0_16 = arith.constant 0 : index
    %c0_17 = arith.constant 0 : index
    %40 = vector.load %arg11[%c0_15, %c0_16, %c0_17] : memref<1x8x96xbf16, #tpu.memory_space<vmem>>, vector<1x8x96xbf16>
    tpu.vector_store %arg11[%c0_15, %c0_16, %c0_17], %39 {strides = array<i32>} : memref<1x8x96xbf16, #tpu.memory_space<vmem>>, vector<1x8x96xbf16>,
    %c0_18 = arith.constant 0 : index
    %c0_19 = arith.constant 0 : index
    %c0_20 = arith.constant 0 : index
    %41 = vector.load %arg11[%c0_18, %c0_19, %c0_20] : memref<1x8x96xbf16, #tpu.memory_space<vmem>>, vector<1x8x8xbf16>
    %c0_21 = arith.constant 0 : index
    %c0_22 = arith.constant 0 : index
    %c32 = arith.constant 32 : index
    %42 = vector.load %arg11[%c0_21, %c0_22, %c32] : memref<1x8x96xbf16, #tpu.memory_space<vmem>>, vector<1x8x8xbf16>
    %c0_23 = arith.constant 0 : index
    %c0_24 = arith.constant 0 : index
    %c64 = arith.constant 64 : index
    %43 = vector.load %arg11[%c0_23, %c0_24, %c64] : memref<1x8x96xbf16, #tpu.memory_space<vmem>>, vector<1x8x8xbf16>
    "tpu.trace_start"() <{level = 10 : i32, message = "bqd,bkd->bqk"}> : () -> ()
    %cst_25 = arith.constant dense<0.000000e+00> : vector<1x8x8xf32>
    %44 = tpu.matmul %41, %42, %cst_25 {dimension_numbers = #tpu.dot_dimension_numbers<[2], [2], [1], [1], [0, 0, 0, 1, 1, 1], [0], [0]>} : vector<1x8x8xbf16>, vector<1x8x8xbf16>, vector<1x8x8xf32> -> vector<1x8x8xf32>
    "tpu.trace_stop"() : () -> ()
    %c0_26 = arith.constant 0 : index
    %c0_27 = arith.constant 0 : index
    %45 = vector.load %arg8[%c0_26, %c0_27] : memref<8x8xf32, #tpu.memory_space<vmem>>, vector<8x8xf32>
    %c0_28 = arith.constant 0 : index
    %46 = memref.load %arg9[%c0_28] : memref<4xf32, #tpu.memory_space<smem>>
    %47 = vector.broadcast %46 : f32 to vector<8x8xf32>
    %48 = arith.mulf %45, %47 : vector<8x8xf32>
    %49 = vector.shape_cast %48 : vector<8x8xf32> to vector<1x8x8xf32>
    %50 = arith.addf %44, %49 : vector<1x8x8xf32>
    %cst_29 = arith.constant dense<0xFF800000> : vector<1x8xf32>
    %51 = vector.multi_reduction <maximumf>, %50, %cst_29 [2] : vector<1x8x8xf32> to vector<1x8xf32>
    %52 = vector.shape_cast %51 : vector<1x8xf32> to vector<1x8x1xf32>
    %53 = vector.broadcast %52 : vector<1x8x1xf32> to vector<1x8x8xf32>
    %54 = arith.subf %50, %53 : vector<1x8x8xf32>
    %55 = math.exp %54 : vector<1x8x8xf32>
    %cst_30 = arith.constant dense<0.000000e+00> : vector<1x8xf32>
    %56 = vector.multi_reduction <add>, %55, %cst_30 [2] : vector<1x8x8xf32> to vector<1x8xf32>
    %57 = vector.shape_cast %56 : vector<1x8xf32> to vector<1x8x1xf32>
    %58 = arith.truncf %55 : vector<1x8x8xf32> to vector<1x8x8xbf16>
    "tpu.trace_start"() <{level = 10 : i32, message = "bqk,bkd->bqd"}> : () -> ()
    %cst_31 = arith.constant dense<0.000000e+00> : vector<1x8x8xf32>
    %59 = tpu.matmul %58, %43, %cst_31 {dimension_numbers = #tpu.dot_dimension_numbers<[2], [1], [1], [2], [0, 0, 0, 1, 1, 2], [0], [0]>} : vector<1x8x8xbf16>, vector<1x8x8xbf16>, vector<1x8x8xf32> -> vector<1x8x8xf32>
    "tpu.trace_stop"() : () -> ()
    %60 = tpu.reciprocal %57 {approx = true} : vector<1x8x1xf32> -> vector<1x8x1xf32>
    %61 = vector.broadcast %60 : vector<1x8x1xf32> to vector<1x8x8xf32>
    %62 = arith.mulf %59, %61 : vector<1x8x8xf32>
    %63 = arith.truncf %62 : vector<1x8x8xf32> to vector<1x8x8xbf16>
    %c0_32 = arith.constant 0 : index
    %c0_33 = arith.constant 0 : index
    %c0_34 = arith.constant 0 : index
    %64 = vector.load %arg12[%c0_32, %c0_33, %c0_34] : memref<1x8x32xbf16, #tpu.memory_space<vmem>>, vector<1x8x8xbf16>
    tpu.vector_store %arg12[%c0_32, %c0_33, %c0_34], %63 {strides = array<i32>} : memref<1x8x32xbf16, #tpu.memory_space<vmem>>, vector<1x8x8xbf16>,
    %c0_35 = arith.constant 0 : index
    %c0_36 = arith.constant 0 : index
    %c8 = arith.constant 8 : index
    %65 = vector.load %arg11[%c0_35, %c0_36, %c8] : memref<1x8x96xbf16, #tpu.memory_space<vmem>>, vector<1x8x8xbf16>
    %c0_37 = arith.constant 0 : index
    %c0_38 = arith.constant 0 : index
    %c40 = arith.constant 40 : index
    %66 = vector.load %arg11[%c0_37, %c0_38, %c40] : memref<1x8x96xbf16, #tpu.memory_space<vmem>>, vector<1x8x8xbf16>
    %c0_39 = arith.constant 0 : index
    %c0_40 = arith.constant 0 : index
    %c72 = arith.constant 72 : index
    %67 = vector.load %arg11[%c0_39, %c0_40, %c72] : memref<1x8x96xbf16, #tpu.memory_space<vmem>>, vector<1x8x8xbf16>
    "tpu.trace_start"() <{level = 10 : i32, message = "bqd,bkd->bqk"}> : () -> ()
    %cst_41 = arith.constant dense<0.000000e+00> : vector<1x8x8xf32>
    %68 = tpu.matmul %65, %66, %cst_41 {dimension_numbers = #tpu.dot_dimension_numbers<[2], [2], [1], [1], [0, 0, 0, 1, 1, 1], [0], [0]>} : vector<1x8x8xbf16>, vector<1x8x8xbf16>, vector<1x8x8xf32> -> vector<1x8x8xf32>
    "tpu.trace_stop"() : () -> ()
    %c0_42 = arith.constant 0 : index
    %c0_43 = arith.constant 0 : index
    %69 = vector.load %arg8[%c0_42, %c0_43] : memref<8x8xf32, #tpu.memory_space<vmem>>, vector<8x8xf32>
    %c1 = arith.constant 1 : index
    %70 = memref.load %arg9[%c1] : memref<4xf32, #tpu.memory_space<smem>>
    %71 = vector.broadcast %70 : f32 to vector<8x8xf32>
    %72 = arith.mulf %69, %71 : vector<8x8xf32>
    %73 = vector.shape_cast %72 : vector<8x8xf32> to vector<1x8x8xf32>
    %74 = arith.addf %68, %73 : vector<1x8x8xf32>
    %cst_44 = arith.constant dense<0xFF800000> : vector<1x8xf32>
    %75 = vector.multi_reduction <maximumf>, %74, %cst_44 [2] : vector<1x8x8xf32> to vector<1x8xf32>
    %76 = vector.shape_cast %75 : vector<1x8xf32> to vector<1x8x1xf32>
    %77 = vector.broadcast %76 : vector<1x8x1xf32> to vector<1x8x8xf32>
    %78 = arith.subf %74, %77 : vector<1x8x8xf32>
    %79 = math.exp %78 : vector<1x8x8xf32>
    %cst_45 = arith.constant dense<0.000000e+00> : vector<1x8xf32>
    %80 = vector.multi_reduction <add>, %79, %cst_45 [2] : vector<1x8x8xf32> to vector<1x8xf32>
    %81 = vector.shape_cast %80 : vector<1x8xf32> to vector<1x8x1xf32>
    %82 = arith.truncf %79 : vector<1x8x8xf32> to vector<1x8x8xbf16>
    "tpu.trace_start"() <{level = 10 : i32, message = "bqk,bkd->bqd"}> : () -> ()
    %cst_46 = arith.constant dense<0.000000e+00> : vector<1x8x8xf32>
    %83 = tpu.matmul %82, %67, %cst_46 {dimension_numbers = #tpu.dot_dimension_numbers<[2], [1], [1], [2], [0, 0, 0, 1, 1, 2], [0], [0]>} : vector<1x8x8xbf16>, vector<1x8x8xbf16>, vector<1x8x8xf32> -> vector<1x8x8xf32>
    "tpu.trace_stop"() : () -> ()
    %84 = tpu.reciprocal %81 {approx = true} : vector<1x8x1xf32> -> vector<1x8x1xf32>
    %85 = vector.broadcast %84 : vector<1x8x1xf32> to vector<1x8x8xf32>
    %86 = arith.mulf %83, %85 : vector<1x8x8xf32>
    %87 = arith.truncf %86 : vector<1x8x8xf32> to vector<1x8x8xbf16>
    %c0_47 = arith.constant 0 : index
    %c0_48 = arith.constant 0 : index
    %c8_49 = arith.constant 8 : index
    %88 = vector.load %arg12[%c0_47, %c0_48, %c8_49] : memref<1x8x32xbf16, #tpu.memory_space<vmem>>, vector<1x8x8xbf16>
    tpu.vector_store %arg12[%c0_47, %c0_48, %c8_49], %87 {strides = array<i32>} : memref<1x8x32xbf16, #tpu.memory_space<vmem>>, vector<1x8x8xbf16>,
    %c0_50 = arith.constant 0 : index
    %c0_51 = arith.constant 0 : index
    %c16 = arith.constant 16 : index
    %89 = vector.load %arg11[%c0_50, %c0_51, %c16] : memref<1x8x96xbf16, #tpu.memory_space<vmem>>, vector<1x8x8xbf16>
    %c0_52 = arith.constant 0 : index
    %c0_53 = arith.constant 0 : index
    %c48 = arith.constant 48 : index
    %90 = vector.load %arg11[%c0_52, %c0_53, %c48] : memref<1x8x96xbf16, #tpu.memory_space<vmem>>, vector<1x8x8xbf16>
    %c0_54 = arith.constant 0 : index
    %c0_55 = arith.constant 0 : index
    %c80 = arith.constant 80 : index
    %91 = vector.load %arg11[%c0_54, %c0_55, %c80] : memref<1x8x96xbf16, #tpu.memory_space<vmem>>, vector<1x8x8xbf16>
    "tpu.trace_start"() <{level = 10 : i32, message = "bqd,bkd->bqk"}> : () -> ()
    %cst_56 = arith.constant dense<0.000000e+00> : vector<1x8x8xf32>
    %92 = tpu.matmul %89, %90, %cst_56 {dimension_numbers = #tpu.dot_dimension_numbers<[2], [2], [1], [1], [0, 0, 0, 1, 1, 1], [0], [0]>} : vector<1x8x8xbf16>, vector<1x8x8xbf16>, vector<1x8x8xf32> -> vector<1x8x8xf32>
    "tpu.trace_stop"() : () -> ()
    %c0_57 = arith.constant 0 : index
    %c0_58 = arith.constant 0 : index
    %93 = vector.load %arg8[%c0_57, %c0_58] : memref<8x8xf32, #tpu.memory_space<vmem>>, vector<8x8xf32>
    %c2 = arith.constant 2 : index
    %94 = memref.load %arg9[%c2] : memref<4xf32, #tpu.memory_space<smem>>
    %95 = vector.broadcast %94 : f32 to vector<8x8xf32>
    %96 = arith.mulf %93, %95 : vector<8x8xf32>
    %97 = vector.shape_cast %96 : vector<8x8xf32> to vector<1x8x8xf32>
    %98 = arith.addf %92, %97 : vector<1x8x8xf32>
    %cst_59 = arith.constant dense<0xFF800000> : vector<1x8xf32>
    %99 = vector.multi_reduction <maximumf>, %98, %cst_59 [2] : vector<1x8x8xf32> to vector<1x8xf32>
    %100 = vector.shape_cast %99 : vector<1x8xf32> to vector<1x8x1xf32>
    %101 = vector.broadcast %100 : vector<1x8x1xf32> to vector<1x8x8xf32>
    %102 = arith.subf %98, %101 : vector<1x8x8xf32>
    %103 = math.exp %102 : vector<1x8x8xf32>
    %cst_60 = arith.constant dense<0.000000e+00> : vector<1x8xf32>
    %104 = vector.multi_reduction <add>, %103, %cst_60 [2] : vector<1x8x8xf32> to vector<1x8xf32>
    %105 = vector.shape_cast %104 : vector<1x8xf32> to vector<1x8x1xf32>
    %106 = arith.truncf %103 : vector<1x8x8xf32> to vector<1x8x8xbf16>
    "tpu.trace_start"() <{level = 10 : i32, message = "bqk,bkd->bqd"}> : () -> ()
    %cst_61 = arith.constant dense<0.000000e+00> : vector<1x8x8xf32>
    %107 = tpu.matmul %106, %91, %cst_61 {dimension_numbers = #tpu.dot_dimension_numbers<[2], [1], [1], [2], [0, 0, 0, 1, 1, 2], [0], [0]>} : vector<1x8x8xbf16>, vector<1x8x8xbf16>, vector<1x8x8xf32> -> vector<1x8x8xf32>
    "tpu.trace_stop"() : () -> ()
    %108 = tpu.reciprocal %105 {approx = true} : vector<1x8x1xf32> -> vector<1x8x1xf32>
    %109 = vector.broadcast %108 : vector<1x8x1xf32> to vector<1x8x8xf32>
    %110 = arith.mulf %107, %109 : vector<1x8x8xf32>
    %111 = arith.truncf %110 : vector<1x8x8xf32> to vector<1x8x8xbf16>
    %c0_62 = arith.constant 0 : index
    %c0_63 = arith.constant 0 : index
    %c16_64 = arith.constant 16 : index
    %112 = vector.load %arg12[%c0_62, %c0_63, %c16_64] : memref<1x8x32xbf16, #tpu.memory_space<vmem>>, vector<1x8x8xbf16>
    tpu.vector_store %arg12[%c0_62, %c0_63, %c16_64], %111 {strides = array<i32>} : memref<1x8x32xbf16, #tpu.memory_space<vmem>>, vector<1x8x8xbf16>,
    %c0_65 = arith.constant 0 : index
    %c0_66 = arith.constant 0 : index
    %c24 = arith.constant 24 : index
    %113 = vector.load %arg11[%c0_65, %c0_66, %c24] : memref<1x8x96xbf16, #tpu.memory_space<vmem>>, vector<1x8x8xbf16>
    %c0_67 = arith.constant 0 : index
    %c0_68 = arith.constant 0 : index
    %c56 = arith.constant 56 : index
    %114 = vector.load %arg11[%c0_67, %c0_68, %c56] : memref<1x8x96xbf16, #tpu.memory_space<vmem>>, vector<1x8x8xbf16>
    %c0_69 = arith.constant 0 : index
    %c0_70 = arith.constant 0 : index
    %c88 = arith.constant 88 : index
    %115 = vector.load %arg11[%c0_69, %c0_70, %c88] : memref<1x8x96xbf16, #tpu.memory_space<vmem>>, vector<1x8x8xbf16>
    "tpu.trace_start"() <{level = 10 : i32, message = "bqd,bkd->bqk"}> : () -> ()
    %cst_71 = arith.constant dense<0.000000e+00> : vector<1x8x8xf32>
    %116 = tpu.matmul %113, %114, %cst_71 {dimension_numbers = #tpu.dot_dimension_numbers<[2], [2], [1], [1], [0, 0, 0, 1, 1, 1], [0], [0]>} : vector<1x8x8xbf16>, vector<1x8x8xbf16>, vector<1x8x8xf32> -> vector<1x8x8xf32>
    "tpu.trace_stop"() : () -> ()
    %c0_72 = arith.constant 0 : index
    %c0_73 = arith.constant 0 : index
    %117 = vector.load %arg8[%c0_72, %c0_73] : memref<8x8xf32, #tpu.memory_space<vmem>>, vector<8x8xf32>
    %c3 = arith.constant 3 : index
    %118 = memref.load %arg9[%c3] : memref<4xf32, #tpu.memory_space<smem>>
    %119 = vector.broadcast %118 : f32 to vector<8x8xf32>
    %120 = arith.mulf %117, %119 : vector<8x8xf32>
    %121 = vector.shape_cast %120 : vector<8x8xf32> to vector<1x8x8xf32>
    %122 = arith.addf %116, %121 : vector<1x8x8xf32>
    %cst_74 = arith.constant dense<0xFF800000> : vector<1x8xf32>
    %123 = vector.multi_reduction <maximumf>, %122, %cst_74 [2] : vector<1x8x8xf32> to vector<1x8xf32>
    %124 = vector.shape_cast %123 : vector<1x8xf32> to vector<1x8x1xf32>
    %125 = vector.broadcast %124 : vector<1x8x1xf32> to vector<1x8x8xf32>
    %126 = arith.subf %122, %125 : vector<1x8x8xf32>
    %127 = math.exp %126 : vector<1x8x8xf32>
    %cst_75 = arith.constant dense<0.000000e+00> : vector<1x8xf32>
    %128 = vector.multi_reduction <add>, %127, %cst_75 [2] : vector<1x8x8xf32> to vector<1x8xf32>
    %129 = vector.shape_cast %128 : vector<1x8xf32> to vector<1x8x1xf32>
    %130 = arith.truncf %127 : vector<1x8x8xf32> to vector<1x8x8xbf16>
    "tpu.trace_start"() <{level = 10 : i32, message = "bqk,bkd->bqd"}> : () -> ()
    %cst_76 = arith.constant dense<0.000000e+00> : vector<1x8x8xf32>
    %131 = tpu.matmul %130, %115, %cst_76 {dimension_numbers = #tpu.dot_dimension_numbers<[2], [1], [1], [2], [0, 0, 0, 1, 1, 2], [0], [0]>} : vector<1x8x8xbf16>, vector<1x8x8xbf16>, vector<1x8x8xf32> -> vector<1x8x8xf32>
    "tpu.trace_stop"() : () -> ()
    %132 = tpu.reciprocal %129 {approx = true} : vector<1x8x1xf32> -> vector<1x8x1xf32>
    %133 = vector.broadcast %132 : vector<1x8x1xf32> to vector<1x8x8xf32>
    %134 = arith.mulf %131, %133 : vector<1x8x8xf32>
    %135 = arith.truncf %134 : vector<1x8x8xf32> to vector<1x8x8xbf16>
    %c0_77 = arith.constant 0 : index
    %c0_78 = arith.constant 0 : index
    %c24_79 = arith.constant 24 : index
    %136 = vector.load %arg12[%c0_77, %c0_78, %c24_79] : memref<1x8x32xbf16, #tpu.memory_space<vmem>>, vector<1x8x8xbf16>
    tpu.vector_store %arg12[%c0_77, %c0_78, %c24_79], %135 {strides = array<i32>} : memref<1x8x32xbf16, #tpu.memory_space<vmem>>, vector<1x8x8xbf16>,
    %c0_80 = arith.constant 0 : index
    %c0_81 = arith.constant 0 : index
    %c0_82 = arith.constant 0 : index
    %137 = vector.load %arg12[%c0_80, %c0_81, %c0_82] : memref<1x8x32xbf16, #tpu.memory_space<vmem>>, vector<1x8x32xbf16>
    %138 = vector.shape_cast %137 : vector<1x8x32xbf16> to vector<8x32xbf16>
    %c0_83 = arith.constant 0 : index
    %c0_84 = arith.constant 0 : index
    %139 = vector.load %arg6[%c0_83, %c0_84] : memref<32x32xbf16, #tpu.memory_space<vmem>>, vector<32x32xbf16>
    %cst_85 = arith.constant dense<0.000000e+00> : vector<8x32xf32>
    %140 = tpu.matmul %138, %139, %cst_85 {dimension_numbers = #tpu.dot_dimension_numbers<[1], [0], [0], [1], [0, 0, 1, 1], [], []>} : vector<8x32xbf16>, vector<32x32xbf16>, vector<8x32xf32> -> vector<8x32xf32>
    %c0_86 = arith.constant 0 : index
    %c0_87 = arith.constant 0 : index
    %c0_88 = arith.constant 0 : index
    %141 = vector.load %arg1[%c0_86, %c0_87, %c0_88] : memref<1x8x32xf32, #tpu.memory_space<vmem>>, vector<1x8x32xf32>
    %142 = vector.shape_cast %141 : vector<1x8x32xf32> to vector<8x32xf32>
    %c0_89 = arith.constant 0 : index
    %c0_90 = arith.constant 0 : index
    %143 = vector.load %arg7[%c0_89, %c0_90] : memref<1x32xf32, #tpu.memory_space<vmem>>, vector<1x32xf32>
    %144 = vector.shape_cast %143 : vector<1x32xf32> to vector<32xf32>
    %145 = vector.shape_cast %144 : vector<32xf32> to vector<1x32xf32>
    %146 = vector.broadcast %145 : vector<1x32xf32> to vector<8x32xf32>
    %147 = arith.addf %140, %146 : vector<8x32xf32>
    %148 = arith.addf %147, %142 : vector<8x32xf32>
    %149 = vector.shape_cast %148 : vector<8x32xf32> to vector<1x8x32xf32>
    %c0_91 = arith.constant 0 : index
    %c0_92 = arith.constant 0 : index
    %c0_93 = arith.constant 0 : index
    %150 = vector.load %arg10[%c0_91, %c0_92, %c0_93] : memref<1x8x32xf32, #tpu.memory_space<vmem>>, vector<1x8x32xf32>
    tpu.vector_store %arg10[%c0_91, %c0_92, %c0_93], %149 {strides = array<i32>} : memref<1x8x32xf32, #tpu.memory_space<vmem>>, vector<1x8x32xf32>,
    return
  }
  func.func @transform_0(%arg0: i32) -> (i32, i32, i32) {
    %c0_i32 = arith.constant 0 : i32
    %c0_i32_0 = arith.constant 0 : i32
    %c0_i32_1 = arith.constant 0 : i32
    return %arg0, %c0_i32, %c0_i32_0 : i32, i32, i32
  }
  func.func @transform_1(%arg0: i32) -> (i32, i32) {
    %c0_i32 = arith.constant 0 : i32
    %c0_i32_0 = arith.constant 0 : i32
    %c0_i32_1 = arith.constant 0 : i32
    return %c0_i32, %c0_i32_0 : i32, i32
  }
  func.func @transform_2(%arg0: i32) -> (i32, i32) {
    %c0_i32 = arith.constant 0 : i32
    %c0_i32_0 = arith.constant 0 : i32
    %c0_i32_1 = arith.constant 0 : i32
    return %c0_i32, %c0_i32_0 : i32, i32
  }
  func.func @transform_3(%arg0: i32) -> (i32, i32) {
    %c0_i32 = arith.constant 0 : i32
    %c0_i32_0 = arith.constant 0 : i32
    %c0_i32_1 = arith.constant 0 : i32
    return %c0_i32, %c0_i32_0 : i32, i32
  }
  func.func @transform_4(%arg0: i32) -> (i32, i32) {
    %c0_i32 = arith.constant 0 : i32
    %c0_i32_0 = arith.constant 0 : i32
    %c0_i32_1 = arith.constant 0 : i32
    return %c0_i32, %c0_i32_0 : i32, i32
  }
  func.func @transform_5(%arg0: i32) -> (i32, i32) {
    %c0_i32 = arith.constant 0 : i32
    %c0_i32_0 = arith.constant 0 : i32
    %c0_i32_1 = arith.constant 0 : i32
    return %c0_i32, %c0_i32_0 : i32, i32
  }
  func.func @transform_6(%arg0: i32) -> (i32, i32) {
    %c0_i32 = arith.constant 0 : i32
    %c0_i32_0 = arith.constant 0 : i32
    %c0_i32_1 = arith.constant 0 : i32
    return %c0_i32, %c0_i32_0 : i32, i32
  }
  func.func @transform_7(%arg0: i32) -> (i32, i32) {
    %c0_i32 = arith.constant 0 : i32
    %c0_i32_0 = arith.constant 0 : i32
    %c0_i32_1 = arith.constant 0 : i32
    return %c0_i32, %c0_i32_0 : i32, i32
  }
  func.func @transform_8(%arg0: i32) -> i32 {
    %c0_i32 = arith.constant 0 : i32
    %c0_i32_0 = arith.constant 0 : i32
    return %c0_i32 : i32
  }
  func.func @transform_9(%arg0: i32) -> (i32, i32, i32) {
    %c0_i32 = arith.constant 0 : i32
    %c0_i32_0 = arith.constant 0 : i32
    %c0_i32_1 = arith.constant 0 : i32
    return %arg0, %c0_i32, %c0_i32_0 : i32, i32, i32
  }
}

</mosaic_0001>

<bundles_post_ra>
// kernel: tpu_custom_call.1
= control target key start
LH: loop header
LB: loop body
LE: loop exit
PB: predicated region body
PF: predicated region fallthrough
CT: control target
= control target key end

     0   :  { %s1701_s0 = inlined_call_operand.hbm [shape: f32[2,8,32], index: 0, kind: input, shape index: {}]   ;;  %s1702_s1 = inlined_call_operand.hbm [shape: f32[1,32], index: 1, kind: input, shape index: {}]   ;;  %s1703_s2 = inlined_call_operand.vmem [shape: f32[1,32], index: 2, kind: input, shape index: {}]   ;;  %s1704_s3 = inlined_call_operand.hbm [shape: bf16[32,96], index: 3, kind: input, shape index: {}]   ;;  %s1705_s4 = inlined_call_operand.vmem [shape: f32[1,96], index: 4, kind: input, shape index: {}]   ;;  %s1706_s5 = inlined_call_operand.hbm [shape: bf16[32,32], index: 5, kind: input, shape index: {}]   ;;  %s1707_s6 = inlined_call_operand.vmem [shape: f32[1,32], index: 6, kind: input, shape index: {}]   ;;  %s1708_s7 = inlined_call_operand.hbm [shape: f32[8,8], index: 7, kind: input, shape index: {}]   ;;  %s1709_s8 = inlined_call_operand.vmem [shape: f32[4], index: 8, kind: input, shape index: {}]   ;;  %s1710_s9 = inlined_call_operand.hbm [shape: f32[2,8,32], index: 9, kind: output, shape index: {}]  }
   0x1   :  { %1711 = sst [smem:[#allocation21_spill]] %s1702_s1 }
   0x2   :  { %1712 = sst [smem:[#allocation22_spill]] %s1704_s3 }
   0x3   :  { %1713 = sst [smem:[#allocation23_spill]] %s1706_s5 }
   0x4   :  { %14 = vsyncpa [#allocation5], 0 }
   0x5   :  { %16 = vsyncpa [#allocation5 + $0x1], 0 }
   0x6   :  { %17 = vsyncpa [#allocation9], 0 }
   0x7   :  { %18 = vsyncpa [#allocation12], 0 }
   0x8   :  { %19 = vsyncpa [#allocation7], 0 }
   0x9   :  { %20 = vsyncpa [#allocation6], 0 }
   0xa   :  { %22 = vsyncpa [#allocation6 + $0x1], 0  ;;  %s1474_s30 = smov 0   ;;  %s1476_s10 = smov 0  }
   0xb   :  { %s1478_s11 = smov 0   ;;  %s1480_s12 = smov 0  }
   0xc LB: > { %s1714_s1 = sld [smem:[#allocation21_spill]]  ;;  %s1498_s16 = sadd.s32 4294967295, %s1400_s12   ;;  %s1400_s12 = sphi %s1480_s12, %s1727_s12   ;;  %s1396_s11 = sphi %s1478_s11, %s1726_s11   ;;  %s1392_s10 = sphi %s1476_s10, %s1725_s10   ;;  %s1388_s30 = sphi %s1474_s30, %s1724_s30  }
   0xd   : > { %p965_p0 = scmp.ge.s32.totalorder %s1400_s12, 1  ;;  %p49_p1 = scmp.eq.s32.totalorder %s1498_s16, 0 }
   0xe   : > { %p253_p2 = scmp.lt.s32.totalorder %s1400_s12, 3  ;;  %s1402_s18 = smov [#allocation8]  }
   0xf   : > { %s267_s19 = sshll.u32 %s1402_s18, 4  ;;  %s1716_s5 = sld [smem:[#allocation23_spill]]  ;;  %s268_s19 = int_to_ptr.vmem [resolvable:$true] %s267_s19 }
  0x10   : > { %p1503_p3 = pnand %p965_p0, %p253_p2  ;;  %s1718_s3 = sld [smem:[#allocation22_spill]] }
  0x11   : > { %s1403_s27 = smov [#allocation11]   ;;  %s1404_s29 = smov 64  }
  0x12   : > { %s265_s15 = sshll.u32 %s1714_s1, 4  ;;  %p1043_p5 = pneg %p1503_p3  ;;  %s266_s15 = int_to_ptr.hbm [resolvable:$true] %s265_s15 }
  0x13   : > { %s298_s28 = sshll.u32 %s1403_s27, 4  ;;  %s1405_s13 = smov 4   ;;  %s299_s28 = int_to_ptr.vmem [resolvable:$true] %s298_s28 }
  0x14   : > { %p1515_p6 = pnand %p1043_p5, %p49_p1  ;;  %s314_s20 = sshll.u32 %s1708_s7, 4  ;;  %s315_s20 = int_to_ptr.hbm [resolvable:$true] %s314_s20 }
  0x15   : > { %s296_s22 = sshll.u32 %s1716_s5, 4  ;;  %s1406_s21 = smov [#allocation10]   ;;  %s297_s22 = int_to_ptr.hbm [resolvable:$true] %s296_s22 }
  0x16   : > { %s279_s26 = sshll.u32 %s1718_s3, 4  ;;  %s281_s24 = sshll.u32 %s1406_s21, 4  ;;  %s280_s26 = int_to_ptr.hbm [resolvable:$true] %s279_s26  ;;  %s282_s24 = int_to_ptr.vmem [resolvable:$true] %s281_s24 }
  0x17   : > { %1046 = dma.hbm_to_vmem [thread:$0]  (!%p1515_p6), %s266_s15, 16, %s268_s19, [#allocation9]  }
  0x18   : > { %1052 = dma.hbm_to_vmem [thread:$0]  (!%p1515_p6), %s297_s22, 256, %s299_s28, [#allocation12], %s1404_s29, %s1404_s29, %s1405_s13  }
  0x19   : > { %1049 = dma.hbm_to_vmem [thread:$0]  (!%p1515_p6), %s280_s26, 256, %s282_s24, [#allocation9], %s1404_s29, %s1404_s29, %s1405_s13  }
  0x1a   : > { %s1407_s15 = smov [#allocation13]   ;;  %s326_s27 = sshll.u32 %s1709_s8, 4  ;;  %s327_s27 = int_to_ptr.vmem [resolvable:$true] %s326_s27 }
  0x1b   : > { %s316_s19 = sshll.u32 %s1407_s15, 4  ;;  %s1408_s28 = smov [#allocation14]   ;;  %s317_s19 = int_to_ptr.vmem [resolvable:$true] %s316_s19 }
  0x1c   : > { %1055 = dma.hbm_to_vmem [thread:$0]  (!%p1515_p6), %s315_s20, 128, %s317_s19, [#allocation12]  }
  0x1d   : > { %1058 = dma.vmem_to_smem (!%p1515_p6), %s327_s27, 16, %s1408_s28, [#allocation7]  }
  0x1e   : > { %s964_s26 = sadd.s32 4294967294, %s1400_s12   ;;  %s1540_s29 = sadd.s32 1, %s1400_s12  }
  0x1f   : > { %s35_s13 = sadd.s32 1, %s1396_s11  ;;  %s32_s14 = ssub.s32 %s1400_s12, %s1540_s29 }
  0x20   : > { %p42_p7 = scmp.ne.s32.totalorder %s1396_s11, %s1392_s10  ;;  %p33_p8 = scmp.eq.s32.totalorder %s32_s14, 0 }
  0x21   : > { %p43_p9 = scmp.eq.s32.totalorder %s1400_s12, 0  ;;  %p48_p10 = scmp.ne.s32.totalorder %s1392_s10, %s1388_s30 }
  0x22   : > { %p240_p11 = scmp.eq.s32.totalorder %s1498_s16, 1  ;;  %p246_p0 = scmp.eq.s32.totalorder %s964_s26, 1 }
  0x23   : > { %s1552_s18 = scalar_select %p33_p8, %s1396_s11, %s35_s13  }
  0x24   : > { %p1556_p12 = por %p49_p1, %p48_p10  ;;  %p1560_p13 = por %p240_p11, %p42_p7 }
  0x25   : > { %p44_p2 = por %p43_p9, %p42_p7  ;;  %s337_s21 = sand.u32 1, %s1396_s11  }
  0x26   : > { %p1565_p5 = por %p246_p0, %p48_p10  ;;  %p1072_p6 = scmp.lt.s32.totalorder %s1400_s12, 2 }
  0x27   : > { %s972_s15 = sshll.u32 %s337_s21, 3  ;;  %s973_s19 = sshll.u32 %s1400_s12, 3 }
  0x28   : > { %s345_s27 = scalar_lea.hbm %s1701_s0, %s973_s19  ;;  %s341_s13 = scalar_lea.vmem [#allocation4], %s972_s15 }
  0x29   : > { %s347_s28 = sshll.u32 %s345_s27, 4  ;;  %s349_s14 = sshll.u32 %s341_s13, 4  ;;  %s348_s28 = int_to_ptr.hbm [resolvable:$true] %s347_s28  ;;  %s350_s14 = int_to_ptr.vmem [resolvable:$true] %s349_s14 }
  0x2a   : > { %p1574_p8 = pnand %p1072_p6, %p44_p2  ;;  %s338_s1 = scalar_lea.sflag [#allocation5], %s337_s21 }
  0x2b   : > { %s1292_s3 = sshra.s32 %s348_s28, 4  ;;  %s1299_s15 = scalar_lea.hbm %s1701_s0, 16  ;;  %s1293_s3 = int_to_ptr.hbm [resolvable:$true] %s1292_s3 }
  0x2c   : > { %s1294_s5 = scalar_lea.hbm %s1293_s3, 8  ;;  %p1296_p9 = pneg %p1574_p8 }
  0x2d   : > { %p1295_p7 = scmp.ne.s32.totalorder %s1293_s3, %s1294_s5  ;;  %p1300_p0 = scmp.lt.s32.totalorder %s1293_s3, %s1701_s0 }
  0x2e   : > { %p1301_p2 = scmp.lt.s32.totalorder %s1299_s15, %s1294_s5 }
  0x2f   : > { %p1297_p10 = pnand %p1296_p9, %p1295_p7 }
  0x30   : > { %p1302_p6 = por %p1301_p2, %p1300_p0 }
  0x31   : > { %p1298_p11 = pneg %p1297_p10 }
  0x33   : > { %p1303_p4 = pnand %p1302_p6, %p1298_p11 }
  0x35   : > { %1306 = shalt.err (!%p1303_p4)
}
  0x36   : > { %1062 = dma.hbm_to_vmem [thread:$0]  (!%p1574_p8), %s348_s28, 128, %s350_s14, %s338_s1  }
  0x37   : > { %358 = sbr.rel (%p1503_p3) target bundleno = 1299 (0x513), region = 56  ;;  %s1591_s21 = sand.u32 (!%p1503_p3), 1, %s1392_s10  }
  0x38   : > { %s975_s13 = sshll.u32 (!%p1503_p3), %s1591_s21, 3  ;;  %s361_s19 = scalar_lea.sflag (!%p1503_p3), [#allocation5], %s1591_s21 }
  0x39   : > { %s364_s3 = scalar_lea.vmem (!%p1503_p3), [#allocation4], %s975_s13 }
  0x3c   : > { %1367 = dma.done.wait (%p1556_p12), %s361_s19, 128  }
  0x3d   : > { %1369 = vsyncadd (%p1556_p12), %s361_s19, 4294967168 }
  0x3e   : > { %1371 = dma.done.wait (%p49_p1), [#allocation9], 272  }
  0x3f   : > { %1373 = vsyncadd (%p49_p1), [#allocation9], 4294967024 }
  0x40   : > { %1375 = dma.done.wait (%p49_p1), [#allocation12], 384  }
  0x41   : > { %1377 = vsyncadd (%p49_p1), [#allocation12], 4294966912 }
  0x42   : > { %1379 = dma.done.wait (%p49_p1), [#allocation7], 16  }
  0x43   : > { %1381 = vsyncadd (%p49_p1), [#allocation7], 4294967280 }
  0x44   : > { %395 = sfence }
  0x45   : > { %v1613_v0 = vld [vmem:[%s364_s3] sm:$0xff]  ;;  %vm428_vm0 = vcmask 261120   ;;  %v1409_v2 = vmov 32.0   ;;  %v1015_v15 = vld [vmem:[#allocation10] sm:$0xff]  ;;  %v1133_v25 = vld [vmem:[#allocation8] ss:$0 sm:$0xff] }
  0x46   : > { %v429_v1 = vsel %vm428_vm0, %v1613_v0, 0.0  ;;  %1137 = vrcp.f32 %v1409_v2  ;;  %v1016_v14 = vld [vmem:[#allocation10 + $0x8] sm:$0xff]  ;;  %v1134_v28 = vld [vmem:[%s1703_s2] ss:$0 sm:$0xff]  ;;  %vm506_vm5 = vcmask 781312   ;;  %s1410_s28 = smov 104  }
  0x47   : > { %430 = vadd.xlane.f32.xlu0 %v429_v1  ;;  %498 = vmatpush.bf16.msra.mxu0 %v1016_v14  ;;  %v1135_v32 = vld [vmem:[%s1705_s4] ss:$0 sm:$0xff]  ;;  %s1411_s14 = smov 120   ;;  %s1412_s26 = smov 96   ;;  %vm553_vm6 = vcmask 1043456   ;;  %vm518_vm7 = vcmask 64512  }
  0x48   : > { %s1413_s22 = smov 56   ;;  %s1414_s15 = smov 72   ;;  %v509_v1 = vld [vmem:[#allocation13] sm:$0xff]  ;;  %vm573_vm8 = vcmask 60416   ;;  %vm644_vm9 = vcmask 126016   ;;  %vm715_vm10 = vcmask 191616  }
  0x49   : > { %s1415_s25 = smov 88   ;;  %s1416_s27 = smov 112   ;;  %vm786_vm11 = vcmask 257216  }
  0x4a   : > { %s1417_s19 = smov 80   ;;  %s1418_s3 = smov 64  }
  0x4b   : > { %499 = vmatpush.bf16.msra.mxu0 %v1015_v15  ;;  %s510_s1 = sld [smem:[#allocation14]] }
  0x4c   : > { %v1138_v3 = vpop.eup %1137  ;;  %s993_s5 = sld [smem:[#allocation14 + $0x1]] }
  0x4d   : > { %v433_v4 = vmul.f32 32.0, %v1138_v3  ;;  %vm437_vm1 = vweird.f32 %v1138_v3  ;;  %s996_s17 = sld [smem:[#allocation14 + $0x2]] }
  0x4e   : > { %s999_s23 = sld [smem:[#allocation14 + $0x3]] }
  0x4f   : > { %v434_v5 = vsub.f32 1.0, %v433_v4 }
  0x51   : > { %v435_v6 = vmul.f32 %v1138_v3, %v434_v5  ;;  %v511_v2 = vstv %s510_s1 }
  0x53   : > { %v436_v7 = vadd.f32 %v1138_v3, %v435_v6 }
  0x55   : > { %v438_v8 = vsel %vm437_vm1, %v1138_v3, %v436_v7  ;;  %v512_v3 = vmul.f32 %v511_v2, %v509_v1 }
  0xba   : > { %v431_v9 = vpop.xlane.xlu0 %430 }
  0xbb   : > { %v439_v10 = vmul.f32 %v438_v8, %v431_v9  ;;  %v649_v9 = vstv %s996_s17  ;;  %s425_s17 = scalar_lea.vmem [#allocation15], %s975_s13  ;;  %s1342_s13 = scalar_lea.hbm %s1710_s9, 16 }
  0xbd   : > { %v440_v11 = vsub.f32 %v1613_v0, %v439_v10 }
  0xbf   : > { %v441_v12 = vmul.f32 %v440_v11, %v440_v11 }
  0xc1   : > { %v442_v13 = vsel %vm428_vm0, %v441_v12, 0.0 }
  0xc2   : > { %443 = vadd.xlane.f32.xlu0 %v442_v13 }
 0x135   : > { %v444_v16 = vpop.xlane.xlu0 %443 }
 0x136   : > { %v445_v17 = vmul.f32 %v444_v16, %v438_v8  ;;  %v578_v8 = vstv %s993_s5 }
 0x137   : > { %v579_v10 = vmul.f32 %v578_v8, %v509_v1 }
 0x138   : > { %v446_v18 = vadd.f32 1e-12, %v445_v17 }
 0x13a   : > { %1139 = vrsqrt.f32 %v446_v18  ;;  %vm453_vm3 = vweird.f32 %v446_v18 }
 0x140   : > { %v1140_v19 = vpop.eup %1139 }
 0x141   : > { %v448_v20 = vmul.f32 %v1140_v19, %v446_v18  ;;  %vm454_vm2 = vweird.f32 %v1140_v19 }
 0x142   : > { %vm455_vm4 = vmor %vm453_vm3, %vm454_vm2 }
 0x143   : > { %v449_v21 = vmul.f32 %v1140_v19, %v448_v20  ;;  %v720_v20 = vstv %s999_s23  ;;  %s841_s23 = sshll.u32 %s425_s17, 4  ;;  %s842_s23 = int_to_ptr.vmem [resolvable:$true] %s841_s23 }
 0x145   : > { %v450_v22 = vmul.f32 0.5, %v449_v21  ;;  %v721_v21 = vmul.f32 %v720_v20, %v509_v1 }
 0x147   : > { %v451_v23 = vsub.f32 1.5, %v450_v22 }
 0x149   : > { %v452_v24 = vmul.f32 %v1140_v19, %v451_v23 }
 0x14b   : > { %v456_v26 = vsel %vm455_vm4, %v1140_v19, %v452_v24 }
 0x14c   : > { %v457_v27 = vmul.f32 %v456_v26, %v440_v11  ;;  %v650_v11 = vmul.f32 %v649_v9, %v509_v1 }
 0x14e   : > { %v462_v29 = vmul.f32 %v1133_v25, %v457_v27 }
 0x150   : > { %v467_v30 = vadd.f32 %v1134_v28, %v462_v29 }
 0x152   : > { %v468_v31 = vpack.c.bf16 %v467_v30, %v467_v30 }
 0x154   : > { %990 = vmatmul.msk.bf16.vlgmr.msra.gmra.mxu0 %vm428_vm0, %v468_v31 }
 0x1d1   : > { %v501_v33 = vpop.f32.mrf.mxu0 }
 0x1d2   : > { %v502_v34 = vadd.f32 %v1135_v32, %v501_v33 }
 0x1d4   : > { %v505_v35 = vpack.c.bf16 %v502_v34, %v502_v34 }
 0x1d6   : > { %507 = vst.msk [vmem:[#allocation2] sm:$0xf] %vm506_vm5, %v505_v35 }
 0x1d9   : > { %v503_v36 = vpop.f32.mrf.mxu0 }
 0x1dd   : > { %v717_v37 = vld [vmem:[#allocation2] sm:$0xf] }
 0x1de   : > { %v575_v38 = vld [vmem:[#allocation2] sm:$0xf]  ;;  %v723_v40 = vunpack.c.l.b16 %v717_v37 }
 0x1df   : > { %v508_v39 = vld [vmem:[#allocation2] sm:$0xf]  ;;  %v581_v41 = vunpack.c.l.b16 %v575_v38 }
 0x1e0   : > { %v514_v42 = vunpack.c.l.b16 %v508_v39  ;;  %v1626_v43 = vpack.c.b16 %v723_v40, %v723_v40  ;;  %v646_v46 = vld [vmem:[#allocation2] sm:$0xf] }
 0x1e1   : > { %v582_v44 = vpack.c.b16 %v581_v41, %v581_v41  ;;  %v652_v47 = vunpack.c.l.b16 %v646_v46 }
 0x1e2   : > { %v515_v45 = vpack.c.b16 %v514_v42, %v514_v42  ;;  %725 = vrot.lane.b32.xlu0 %v1626_v43, %s1410_s28  ;;  %s1419_s28 = smov 40  }
 0x1e3   : > { %583 = vrot.lane.b32.xlu2 %v582_v44, %s1411_s14  ;;  %v1630_v48 = vpack.c.b16 %v652_v47, %v652_v47  ;;  %s1420_s14 = smov 48  }
 0x1e4   : > { %516 = vrot.lane.b32.xlu1 %v515_v45, %s1412_s26  ;;  %s1421_s26 = smov 16  }
 0x1ea   : > { %616 = vrot.lane.b32.xlu0 %v582_v44, %s1413_s22  ;;  %s1422_s22 = smov 8  }
 0x1eb   : > { %727 = vrot.lane.b32.xlu2 %v1626_v43, %s1414_s15  ;;  %s1423_s15 = smov 24  }
 0x1ec   : > { %585 = vrot.lane.b32.xlu1 %v582_v44, %s1415_s25  ;;  %s1012_s25 = sshll.u32 %s1498_s16, 3  ;;  %s829_s16 = scalar_lea.sflag [#allocation6], %s1591_s21 }
 0x1ed   : > { %s839_s5 = scalar_lea.hbm %s1710_s9, %s1012_s25 }
 0x1f3   : > { %654 = vrot.lane.b32.xlu2 %v1630_v48, %s1416_s27 }
 0x1f4   : > { %656 = vrot.lane.b32.xlu1 %v1630_v48, %s1417_s19 }
 0x1fb   : > { %548 = vrot.lane.b32.xlu2 %v515_v45, %s1418_s3 }
 0x23d   : > { %v584_v49 = vpop.permute.xlu2 %583 }
 0x245   : > { %v728_v50 = vpop.permute.xlu2 %727 }
 0x246   : > { %v733_v61 = vsel %vm518_vm7, %v728_v50, 0 }
 0x24d   : > { %v655_v51 = vpop.permute.xlu2 %654 }
 0x254   : > { %v726_v52 = vpop.permute.xlu0 %725 }
 0x255   : > { %v549_v53 = vpop.permute.xlu2 %548 }
 0x256   : > { %v517_v54 = vpop.permute.xlu1 %516  ;;  %v555_v55 = vsel %vm553_vm6, %v549_v53, 0 }
 0x257   : > { %v523_v56 = vsel %vm518_vm7, %v517_v54, 0  ;;  %564 = vmatpush.bf16.msra.mxu2 %v555_v55 }
 0x258   : > { %532 = vmatpush.bf16.xpose.msra.mxu1 %v523_v56 }
 0x25c   : > { %v617_v57 = vpop.permute.xlu0 %616 }
 0x25d   : > { %v622_v59 = vsel %vm553_vm6, %v617_v57, 0 }
 0x25e   : > { %v586_v58 = vpop.permute.xlu1 %585  ;;  %631 = vmatpush.bf16.msrb.mxu2 %v622_v59 }
 0x25f   : > { %991 = vmatmul.msk.bf16.vlgmr.msra.gmra.mxu1 %vm518_vm7, %v508_v39  ;;  %v591_v60 = vsel %vm518_vm7, %v586_v58, 0 }
 0x260   : > { %600 = vmatpush.bf16.xpose.msra.mxu3 %v591_v60 }
 0x266   : > { %v657_v62 = vpop.permute.xlu1 %656 }
 0x267   : > { %994 = vmatmul.msk.bf16.vlgmr.msra.gmra.mxu3 %vm518_vm7, %v584_v49  ;;  %v662_v63 = vsel %vm518_vm7, %v657_v62, 0 }
 0x268   : > { %742 = vmatpush.bf16.xpose.msrb.mxu3 %v733_v61  ;;  %671 = vmatpush.bf16.xpose.msrb.mxu0 %v662_v63 }
 0x26f   : > { %997 = vmatmul.msk.bf16.vlgmr.msrb.gmra.mxu0 %vm518_vm7, %v655_v51 }
 0x277   : > { %1000 = vmatmul.msk.bf16.vlgmr.msrb.gmra.mxu3 %vm518_vm7, %v726_v52 }
 0x2dc   : > { %v534_v4 = vpop.f32.mrf.mxu1 }
 0x2dd   : > { %v535_v5 = vadd.f32 %v534_v4, %v512_v3 }
 0x2df   : > { %v538_v6 = vsel %vm518_vm7, %v535_v5, -inf }
 0x2e0   : > { %539 = vmax.xlane.f32.xlu1 %v538_v6 }
 0x2e4   : > { %v536_v7 = vpop.f32.mrf.mxu1 }
 0x2ea   : > { %v602_v12 = vpop.f32.mrf.mxu3 }
 0x2eb   : > { %v603_v13 = vadd.f32 %v602_v12, %v579_v10 }
 0x2ec   : > { %v673_v14 = vpop.f32.mrf.mxu0 }
 0x2ed   : > { %v674_v15 = vadd.f32 %v673_v14, %v650_v11  ;;  %v606_v16 = vsel %vm518_vm7, %v603_v13, -inf }
 0x2ee   : > { %607 = vmax.xlane.f32.xlu2 %v606_v16  ;;  %v1017_v16 = vld [vmem:[#allocation11] sm:$0xff] }
 0x2ef   : > { %v677_v17 = vsel %vm518_vm7, %v674_v15, -inf }
 0x2f0   : > { %678 = vmax.xlane.f32.xlu1 %v677_v17 }
 0x2f2   : > { %v604_v18 = vpop.f32.mrf.mxu3 }
 0x2f4   : > { %v675_v19 = vpop.f32.mrf.mxu0 }
 0x2fa   : > { %v744_v22 = vpop.f32.mrf.mxu3 }
 0x2fb   : > { %v745_v23 = vadd.f32 %v744_v22, %v721_v21  ;;  %v1136_v21 = vld [vmem:[%s1707_s6] ss:$0 sm:$0xff] }
 0x2fd   : > { %v748_v24 = vsel %vm518_vm7, %v745_v23, -inf }
 0x2fe   : > { %749 = vmax.xlane.f32.xlu0 %v748_v24 }
 0x302   : > { %v746_v25 = vpop.f32.mrf.mxu3 }
 0x306   : > { %758 = vrot.lane.b32.xlu2 %v1626_v43, %s1419_s28  ;;  %s843_s28 = sshll.u32 %s839_s5, 4  ;;  %s844_s28 = int_to_ptr.hbm [resolvable:$true] %s843_s28 }
 0x309   : > { %687 = vrot.lane.b32.xlu1 %v1630_v48, %s1420_s14  ;;  %s1336_s14 = sshra.s32 %s844_s28, 4  ;;  %s1337_s14 = int_to_ptr.hbm [resolvable:$true] %s1336_s14 }
 0x30a   : > { %p1343_p12 = scmp.lt.s32.totalorder %s1337_s14, %s1710_s9 }
 0x353   : > { %v540_v26 = vpop.xlane.xlu1 %539 }
 0x354   : > { %v541_v27 = vsub.f32 %v535_v5, %v540_v26 }
 0x356   : > { %v542_v28 = vmul.f32 1.442695, %v541_v27 }
 0x358   : > { %1141 = vpow2.f32 %v542_v28 }
 0x35e   : > { %v1142_v29 = vpop.eup %1141 }
 0x35f   : > { %v544_v30 = vsel %vm518_vm7, %v1142_v29, 0.0  ;;  %v547_v31 = vpack.c.bf16 %v1142_v29, %v1142_v29 }
 0x360   : > { %545 = vadd.xlane.f32.xlu1 %v544_v30 }
 0x361   : > { %v608_v32 = vpop.xlane.xlu2 %607  ;;  %992 = vmatmul.msk.bf16.vlgmr.msra.gmra.mxu2 %vm518_vm7, %v547_v31 }
 0x362   : > { %v609_v33 = vsub.f32 %v603_v13, %v608_v32 }
 0x363   : > { %v679_v34 = vpop.xlane.xlu1 %678 }
 0x364   : > { %v610_v35 = vmul.f32 1.442695, %v609_v33  ;;  %v680_v36 = vsub.f32 %v674_v15, %v679_v34  ;;  %v1018_v15 = vld [vmem:[#allocation11 + $0x8] sm:$0xff] }
 0x365   : > { %819 = vmatpush.bf16.msra.mxu0 %v1018_v15 }
 0x366   : > { %1143 = vpow2.f32 %v610_v35  ;;  %v681_v37 = vmul.f32 1.442695, %v680_v36 }
 0x368   : > { %1145 = vpow2.f32 %v681_v37 }
 0x369   : > { %v759_v38 = vpop.permute.xlu2 %758  ;;  %820 = vmatpush.bf16.msra.mxu0 %v1017_v16 }
 0x36a   : > { %v764_v39 = vsel %vm553_vm6, %v759_v38, 0 }
 0x36b   : > { %773 = vmatpush.bf16.msra.mxu2 %v764_v39 }
 0x36c   : > { %v1144_v40 = vpop.eup %1143 }
 0x36d   : > { %v615_v43 = vpack.c.bf16 %v1144_v40, %v1144_v40  ;;  %v612_v47 = vsel %vm518_vm7, %v1144_v40, 0.0 }
 0x36e   : > { %v1146_v41 = vpop.eup %1145 }
 0x36f   : > { %v683_v42 = vsel %vm518_vm7, %v1146_v41, 0.0  ;;  %v686_v52 = vpack.c.bf16 %v1146_v41, %v1146_v41 }
 0x370   : > { %684 = vadd.xlane.f32.xlu0 %v683_v42 }
 0x371   : > { %v750_v44 = vpop.xlane.xlu0 %749  ;;  %995 = vmatmul.msk.bf16.vlgmr.msrb.gmra.mxu2 %vm518_vm7, %v615_v43 }
 0x372   : > { %v751_v45 = vsub.f32 %v745_v23, %v750_v44 }
 0x374   : > { %v752_v46 = vmul.f32 1.442695, %v751_v45 }
 0x376   : > { %1147 = vpow2.f32 %v752_v46 }
 0x378   : > { %613 = vadd.xlane.f32.xlu0 %v612_v47 }
 0x37b   : > { %v688_v48 = vpop.permute.xlu1 %687 }
 0x37c   : > { %v1148_v49 = vpop.eup %1147  ;;  %v693_v50 = vsel %vm553_vm6, %v688_v48, 0 }
 0x37d   : > { %702 = vmatpush.bf16.msrb.mxu1 %v693_v50  ;;  %v754_v51 = vsel %vm518_vm7, %v1148_v49, 0.0  ;;  %v757_v53 = vpack.c.bf16 %v1148_v49, %v1148_v49 }
 0x37e   : > { %755 = vadd.xlane.f32.xlu2 %v754_v51 }
 0x380   : > { %998 = vmatmul.msk.bf16.vlgmr.msrb.gmra.mxu1 %vm518_vm7, %v686_v52 }
 0x381   : > { %1001 = vmatmul.msk.bf16.vlgmr.msra.gmra.mxu2 %vm518_vm7, %v757_v53 }
 0x3d3   : > { %v546_v54 = vpop.xlane.xlu1 %545 }
 0x3d4   : > { %1149 = vrcp.f32 %v546_v54 }
 0x3da   : > { %v1150_v55 = vpop.eup %1149 }
 0x3e3   : > { %v685_v60 = vpop.xlane.xlu0 %684 }
 0x3e4   : > { %v566_v56 = vpop.f32.mrf.mxu2  ;;  %1151 = vrcp.f32 %v685_v60 }
 0x3e5   : > { %v571_v57 = vmul.f32 %v1150_v55, %v566_v56 }
 0x3e7   : > { %v572_v58 = vpack.c.bf16 %v571_v57, %v571_v57 }
 0x3e9   : > { %574 = vst.msk [vmem:[#allocation3] sm:$0xf] %vm573_vm8, %v572_v58 }
 0x3ea   : > { %v1152_v1 = vpop.eup %1151 }
 0x3eb   : > { %v614_v62 = vpop.xlane.xlu0 %613 }
 0x3ec   : > { %v568_v59 = vpop.f32.mrf.mxu2  ;;  %1153 = vrcp.f32 %v614_v62 }
 0x3f1   : > { %v756_v5 = vpop.xlane.xlu2 %755 }
 0x3f2   : > { %v1154_v6 = vpop.eup %1153  ;;  %1155 = vrcp.f32 %v756_v5 }
 0x3f4   : > { %v633_v61 = vpop.f32.mrf.mxu2 }
 0x3f5   : > { %v638_v7 = vmul.f32 %v1154_v6, %v633_v61 }
 0x3f7   : > { %v639_v10 = vpack.c.bf16 %v638_v7, %v638_v7 }
 0x3f8   : > { %v1156_v11 = vpop.eup %1155 }
 0x3fc   : > { %v635_v63 = vpop.f32.mrf.mxu2 }
 0x3fd   : > { %v704_v2 = vpop.f32.mrf.mxu1 }
 0x3fe   : > { %v709_v3 = vmul.f32 %v1152_v1, %v704_v2 }
 0x400   : > { %v710_v4 = vpack.c.bf16 %v709_v3, %v709_v3 }
 0x402   : > { %712 = vrot.lane.b32.xlu0 %v710_v4, %s1421_s26  ;;  %s1338_s26 = scalar_lea.hbm %s1337_s14, 8 }
 0x403   : > { %p1339_p1 = scmp.ne.s32.totalorder %s1337_s14, %s1338_s26  ;;  %p1344_p8 = scmp.lt.s32.totalorder %s1342_s13, %s1338_s26 }
 0x404   : > { %v775_v8 = vpop.f32.mrf.mxu2 }
 0x405   : > { %v706_v9 = vpop.f32.mrf.mxu1  ;;  %v780_v12 = vmul.f32 %v1156_v11, %v775_v8  ;;  %p1340_p3 = pnand %p1339_p1, %p1560_p13  ;;  %p1345_p7 = por %p1344_p8, %p1343_p12 }
 0x407   : > { %v781_v14 = vpack.c.bf16 %v780_v12, %v780_v12  ;;  %p1341_p4 = pneg %p1340_p3 }
 0x409   : > { %p1346_p9 = pnand %p1345_p7, %p1341_p4 }
 0x40a   : > { %641 = vrot.lane.b32.xlu0 %v639_v10, %s1422_s22 }
 0x40c   : > { %v777_v13 = vpop.f32.mrf.mxu2 }
 0x412   : > { %783 = vrot.lane.b32.xlu0 %v781_v14, %s1423_s15 }
 0x474   : > { %v713_v17 = vpop.permute.xlu0 %712 }
 0x47c   : > { %v642_v18 = vpop.permute.xlu0 %641 }
 0x47d   : > { %645 = vst.msk [vmem:[#allocation3] sm:$0xf] %vm644_vm9, %v642_v18 }
 0x47e   : > { %716 = vst.msk [vmem:[#allocation3] sm:$0xf] %vm715_vm10, %v713_v17 }
 0x484   : > { %v784_v19 = vpop.permute.xlu0 %783 }
 0x485   : > { %787 = vst.msk [vmem:[#allocation3] sm:$0xf] %vm786_vm11, %v784_v19 }
 0x48c   : > { %v788_v20 = vld [vmem:[#allocation3] sm:$0xf] }
 0x48d   : > { %1010 = vmatmul.msk.bf16.vlgmr.msra.gmra.mxu0 %vm428_vm0, %v788_v20 }
 0x50a   : > { %v822_v22 = vpop.f32.mrf.mxu0 }
 0x50b   : > { %v823_v23 = vadd.f32 %v1136_v21, %v822_v22 }
 0x50d   : > { %v826_v24 = vadd.f32 %v823_v23, %v1613_v0 }
 0x50f   : > { %827 = vst.msk [vmem:[%s425_s17] sm:$0xff] %vm428_vm0, %v826_v24 }
 0x510   : > { %1349 = shalt.err (!%p1346_p9)
}
 0x511   : > { %1041 = dma.vmem_to_hbm [thread:$0]  (%p1560_p13), %s842_s23, 128, %s844_s28, %s829_s16  }
 0x512   : > { %v824_v0 = vpop.f32.mrf.mxu0 }
 0x513 PF: > { %s855_s21 = sand.u32 1, %s1388_s30   ;;  %p1723_p10 = scmp.ge.s32.totalorder %s1400_s12, 2 }
 0x514   : > { %s856_s19 = scalar_lea.sflag [#allocation6], %s855_s21 }
 0x515   : > { %p1064_p11 = pnand %p1723_p10, %p1565_p5 }
 0x517   : > { %p1065_p0 = pneg %p1064_p11 }
 0x519   : > { %1383 = dma.done.wait (%p1065_p0), %s856_s19, 128  }
 0x51a   : > { %1385 = vsyncadd (%p1065_p0), %s856_s19, 4294967168  ;;  %p25_p2 = scmp.ge.s32.totalorder %s1540_s29, 4   ;;  %s1724_s30 = smov %s1392_s10 }
 0x51b   : > { %s1725_s10 = smov %s1396_s11  ;;  %s1726_s11 = smov %s1552_s18 }
 0x51c   : > { %s1727_s12 = smov %s1540_s29  ;;  %27 = sbr.rel (!%p25_p2) target bundleno = 12 (0xc), region = 122 }
 0x521   :  { %862 = vsyncpa [#allocation5], 1 }
 0x522   :  { %864 = vsyncpa [#allocation5 + $0x1], 1 }
 0x523   :  { %865 = vsyncpa [#allocation9], 1 }
 0x524   :  { %866 = vsyncpa [#allocation12], 1 }
 0x525   :  { %867 = vsyncpa [#allocation6], 1 }
 0x526   :  { %869 = vsyncpa [#allocation6 + $0x1], 1 }
 0x527   :  { %870 = vsyncpa [#allocation7], 1 }
 0x528   :  { %872 = vsyncpa [#allocation7 + $0x1], 1 }

// kernel: tpu_custom_call.1
= control target key start
LH: loop header
LB: loop body
LE: loop exit
PB: predicated region body
PF: predicated region fallthrough
CT: control target
= control target key end

     0   :  { %s1701_s0 = inlined_call_operand.hbm [shape: f32[2,8,32], index: 0, kind: input, shape index: {}]   ;;  %s1702_s1 = inlined_call_operand.hbm [shape: f32[1,32], index: 1, kind: input, shape index: {}]   ;;  %s1703_s2 = inlined_call_operand.vmem [shape: f32[1,32], index: 2, kind: input, shape index: {}]   ;;  %s1704_s3 = inlined_call_operand.hbm [shape: bf16[32,96], index: 3, kind: input, shape index: {}]   ;;  %s1705_s4 = inlined_call_operand.vmem [shape: f32[1,96], index: 4, kind: input, shape index: {}]   ;;  %s1706_s5 = inlined_call_operand.hbm [shape: bf16[32,32], index: 5, kind: input, shape index: {}]   ;;  %s1707_s6 = inlined_call_operand.vmem [shape: f32[1,32], index: 6, kind: input, shape index: {}]   ;;  %s1708_s7 = inlined_call_operand.hbm [shape: f32[8,8], index: 7, kind: input, shape index: {}]   ;;  %s1709_s8 = inlined_call_operand.vmem [shape: f32[4], index: 8, kind: input, shape index: {}]   ;;  %s1710_s9 = inlined_call_operand.hbm [shape: f32[2,8,32], index: 9, kind: output, shape index: {}]  }
   0x1   :  { %1711 = sst [smem:[#allocation21_spill]] %s1702_s1 }
   0x2   :  { %1712 = sst [smem:[#allocation22_spill]] %s1704_s3 }
   0x3   :  { %1713 = sst [smem:[#allocation23_spill]] %s1706_s5 }
   0x4   :  { %14 = vsyncpa [#allocation5], 0 }
   0x5   :  { %16 = vsyncpa [#allocation5 + $0x1], 0 }
   0x6   :  { %17 = vsyncpa [#allocation9], 0 }
   0x7   :  { %18 = vsyncpa [#allocation12], 0 }
   0x8   :  { %19 = vsyncpa [#allocation7], 0 }
   0x9   :  { %20 = vsyncpa [#allocation6], 0 }
   0xa   :  { %22 = vsyncpa [#allocation6 + $0x1], 0  ;;  %s1474_s30 = smov 0   ;;  %s1476_s10 = smov 0  }
   0xb   :  { %s1478_s11 = smov 0   ;;  %s1480_s12 = smov 0  }
   0xc LB: > { %s1714_s1 = sld [smem:[#allocation21_spill]]  ;;  %s1498_s16 = sadd.s32 4294967295, %s1400_s12   ;;  %s1400_s12 = sphi %s1480_s12, %s1727_s12   ;;  %s1396_s11 = sphi %s1478_s11, %s1726_s11   ;;  %s1392_s10 = sphi %s1476_s10, %s1725_s10   ;;  %s1388_s30 = sphi %s1474_s30, %s1724_s30  }
   0xd   : > { %p965_p0 = scmp.ge.s32.totalorder %s1400_s12, 1  ;;  %p49_p1 = scmp.eq.s32.totalorder %s1498_s16, 0 }
   0xe   : > { %p253_p2 = scmp.lt.s32.totalorder %s1400_s12, 3  ;;  %s1402_s18 = smov [#allocation8]  }
   0xf   : > { %s267_s19 = sshll.u32 %s1402_s18, 4  ;;  %s1716_s5 = sld [smem:[#allocation23_spill]]  ;;  %s268_s19 = int_to_ptr.vmem [resolvable:$true] %s267_s19 }
  0x10   : > { %p1503_p3 = pnand %p965_p0, %p253_p2  ;;  %s1718_s3 = sld [smem:[#allocation22_spill]] }
  0x11   : > { %s1403_s27 = smov [#allocation11]   ;;  %s1404_s29 = smov 64  }
  0x12   : > { %s265_s15 = sshll.u32 %s1714_s1, 4  ;;  %p1043_p5 = pneg %p1503_p3  ;;  %s266_s15 = int_to_ptr.hbm [resolvable:$true] %s265_s15 }
  0x13   : > { %s298_s28 = sshll.u32 %s1403_s27, 4  ;;  %s1405_s13 = smov 4   ;;  %s299_s28 = int_to_ptr.vmem [resolvable:$true] %s298_s28 }
  0x14   : > { %p1515_p6 = pnand %p1043_p5, %p49_p1  ;;  %s314_s20 = sshll.u32 %s1708_s7, 4  ;;  %s315_s20 = int_to_ptr.hbm [resolvable:$true] %s314_s20 }
  0x15   : > { %s296_s22 = sshll.u32 %s1716_s5, 4  ;;  %s1406_s21 = smov [#allocation10]   ;;  %s297_s22 = int_to_ptr.hbm [resolvable:$true] %s296_s22 }
  0x16   : > { %s279_s26 = sshll.u32 %s1718_s3, 4  ;;  %s281_s24 = sshll.u32 %s1406_s21, 4  ;;  %s280_s26 = int_to_ptr.hbm [resolvable:$true] %s279_s26  ;;  %s282_s24 = int_to_ptr.vmem [resolvable:$true] %s281_s24 }
  0x17   : > { %1046 = dma.hbm_to_vmem [thread:$0]  (!%p1515_p6), %s266_s15, 16, %s268_s19, [#allocation9]  }
  0x18   : > { %1052 = dma.hbm_to_vmem [thread:$0]  (!%p1515_p6), %s297_s22, 256, %s299_s28, [#allocation12], %s1404_s29, %s1404_s29, %s1405_s13  }
  0x19   : > { %1049 = dma.hbm_to_vmem [thread:$0]  (!%p1515_p6), %s280_s26, 256, %s282_s24, [#allocation9], %s1404_s29, %s1404_s29, %s1405_s13  }
  0x1a   : > { %s1407_s15 = smov [#allocation13]   ;;  %s326_s27 = sshll.u32 %s1709_s8, 4  ;;  %s327_s27 = int_to_ptr.vmem [resolvable:$true] %s326_s27 }
  0x1b   : > { %s316_s19 = sshll.u32 %s1407_s15, 4  ;;  %s1408_s28 = smov [#allocation14]   ;;  %s317_s19 = int_to_ptr.vmem [resolvable:$true] %s316_s19 }
  0x1c   : > { %1055 = dma.hbm_to_vmem [thread:$0]  (!%p1515_p6), %s315_s20, 128, %s317_s19, [#allocation12]  }
  0x1d   : > { %1058 = dma.vmem_to_smem (!%p1515_p6), %s327_s27, 16, %s1408_s28, [#allocation7]  }
  0x1e   : > { %s964_s26 = sadd.s32 4294967294, %s1400_s12   ;;  %s1540_s29 = sadd.s32 1, %s1400_s12  }
  0x1f   : > { %s35_s13 = sadd.s32 1, %s1396_s11  ;;  %s32_s14 = ssub.s32 %s1400_s12, %s1540_s29 }
  0x20   : > { %p42_p7 = scmp.ne.s32.totalorder %s1396_s11, %s1392_s10  ;;  %p33_p8 = scmp.eq.s32.totalorder %s32_s14, 0 }
  0x21   : > { %p43_p9 = scmp.eq.s32.totalorder %s1400_s12, 0  ;;  %p48_p10 = scmp.ne.s32.totalorder %s1392_s10, %s1388_s30 }
  0x22   : > { %p240_p11 = scmp.eq.s32.totalorder %s1498_s16, 1  ;;  %p246_p0 = scmp.eq.s32.totalorder %s964_s26, 1 }
  0x23   : > { %s1552_s18 = scalar_select %p33_p8, %s1396_s11, %s35_s13  }
  0x24   : > { %p1556_p12 = por %p49_p1, %p48_p10  ;;  %p1560_p13 = por %p240_p11, %p42_p7 }
  0x25   : > { %p44_p2 = por %p43_p9, %p42_p7  ;;  %s337_s21 = sand.u32 1, %s1396_s11  }
  0x26   : > { %p1565_p5 = por %p246_p0, %p48_p10  ;;  %p1072_p6 = scmp.lt.s32.totalorder %s1400_s12, 2 }
  0x27   : > { %s972_s15 = sshll.u32 %s337_s21, 3  ;;  %s973_s19 = sshll.u32 %s1400_s12, 3 }
  0x28   : > { %s345_s27 = scalar_lea.hbm %s1701_s0, %s973_s19  ;;  %s341_s13 = scalar_lea.vmem [#allocation4], %s972_s15 }
  0x29   : > { %s347_s28 = sshll.u32 %s345_s27, 4  ;;  %s349_s14 = sshll.u32 %s341_s13, 4  ;;  %s348_s28 = int_to_ptr.hbm [resolvable:$true] %s347_s28  ;;  %s350_s14 = int_to_ptr.vmem [resolvable:$true] %s349_s14 }
  0x2a   : > { %p1574_p8 = pnand %p1072_p6, %p44_p2  ;;  %s338_s1 = scalar_lea.sflag [#allocation5], %s337_s21 }
  0x2b   : > { %s1292_s3 = sshra.s32 %s348_s28, 4  ;;  %s1299_s15 = scalar_lea.hbm %s1701_s0, 16  ;;  %s1293_s3 = int_to_ptr.hbm [resolvable:$true] %s1292_s3 }
  0x2c   : > { %s1294_s5 = scalar_lea.hbm %s1293_s3, 8  ;;  %p1296_p9 = pneg %p1574_p8 }
  0x2d   : > { %p1295_p7 = scmp.ne.s32.totalorder %s1293_s3, %s1294_s5  ;;  %p1300_p0 = scmp.lt.s32.totalorder %s1293_s3, %s1701_s0 }
  0x2e   : > { %p1301_p2 = scmp.lt.s32.totalorder %s1299_s15, %s1294_s5 }
  0x2f   : > { %p1297_p10 = pnand %p1296_p9, %p1295_p7 }
  0x30   : > { %p1302_p6 = por %p1301_p2, %p1300_p0 }
  0x31   : > { %p1298_p11 = pneg %p1297_p10 }
  0x33   : > { %p1303_p4 = pnand %p1302_p6, %p1298_p11 }
  0x35   : > { %1306 = shalt.err (!%p1303_p4)
}
  0x36   : > { %1062 = dma.hbm_to_vmem [thread:$0]  (!%p1574_p8), %s348_s28, 128, %s350_s14, %s338_s1  }
  0x37   : > { %358 = sbr.rel (%p1503_p3) target bundleno = 1299 (0x513), region = 56  ;;  %s1591_s21 = sand.u32 (!%p1503_p3), 1, %s1392_s10  }
  0x38   : > { %s975_s13 = sshll.u32 (!%p1503_p3), %s1591_s21, 3  ;;  %s361_s19 = scalar_lea.sflag (!%p1503_p3), [#allocation5], %s1591_s21 }
  0x39   : > { %s364_s3 = scalar_lea.vmem (!%p1503_p3), [#allocation4], %s975_s13 }
  0x3c   : > { %1367 = dma.done.wait (%p1556_p12), %s361_s19, 128  }
  0x3d   : > { %1369 = vsyncadd (%p1556_p12), %s361_s19, 4294967168 }
  0x3e   : > { %1371 = dma.done.wait (%p49_p1), [#allocation9], 272  }
  0x3f   : > { %1373 = vsyncadd (%p49_p1), [#allocation9], 4294967024 }
  0x40   : > { %1375 = dma.done.wait (%p49_p1), [#allocation12], 384  }
  0x41   : > { %1377 = vsyncadd (%p49_p1), [#allocation12], 4294966912 }
  0x42   : > { %1379 = dma.done.wait (%p49_p1), [#allocation7], 16  }
  0x43   : > { %1381 = vsyncadd (%p49_p1), [#allocation7], 4294967280 }
  0x44   : > { %395 = sfence }
  0x45   : > { %v1613_v0 = vld [vmem:[%s364_s3] sm:$0xff]  ;;  %vm428_vm0 = vcmask 261120   ;;  %v1409_v2 = vmov 32.0   ;;  %v1015_v15 = vld [vmem:[#allocation10] sm:$0xff]  ;;  %v1133_v25 = vld [vmem:[#allocation8] ss:$0 sm:$0xff] }
  0x46   : > { %v429_v1 = vsel %vm428_vm0, %v1613_v0, 0.0  ;;  %1137 = vrcp.f32 %v1409_v2  ;;  %v1016_v14 = vld [vmem:[#allocation10 + $0x8] sm:$0xff]  ;;  %v1134_v28 = vld [vmem:[%s1703_s2] ss:$0 sm:$0xff]  ;;  %vm506_vm5 = vcmask 781312   ;;  %s1410_s28 = smov 104  }
  0x47   : > { %430 = vadd.xlane.f32.xlu0 %v429_v1  ;;  %498 = vmatpush.bf16.msra.mxu0 %v1016_v14  ;;  %v1135_v32 = vld [vmem:[%s1705_s4] ss:$0 sm:$0xff]  ;;  %s1411_s14 = smov 120   ;;  %s1412_s26 = smov 96   ;;  %vm553_vm6 = vcmask 1043456   ;;  %vm518_vm7 = vcmask 64512  }
  0x48   : > { %s1413_s22 = smov 56   ;;  %s1414_s15 = smov 72   ;;  %v509_v1 = vld [vmem:[#allocation13] sm:$0xff]  ;;  %vm573_vm8 = vcmask 60416   ;;  %vm644_vm9 = vcmask 126016   ;;  %vm715_vm10 = vcmask 191616  }
  0x49   : > { %s1415_s25 = smov 88   ;;  %s1416_s27 = smov 112   ;;  %vm786_vm11 = vcmask 257216  }
  0x4a   : > { %s1417_s19 = smov 80   ;;  %s1418_s3 = smov 64  }
  0x4b   : > { %499 = vmatpush.bf16.msra.mxu0 %v1015_v15  ;;  %s510_s1 = sld [smem:[#allocation14]] }
  0x4c   : > { %v1138_v3 = vpop.eup %1137  ;;  %s993_s5 = sld [smem:[#allocation14 + $0x1]] }
  0x4d   : > { %v433_v4 = vmul.f32 32.0, %v1138_v3  ;;  %vm437_vm1 = vweird.f32 %v1138_v3  ;;  %s996_s17 = sld [smem:[#allocation14 + $0x2]] }
  0x4e   : > { %s999_s23 = sld [smem:[#allocation14 + $0x3]] }
  0x4f   : > { %v434_v5 = vsub.f32 1.0, %v433_v4 }
  0x51   : > { %v435_v6 = vmul.f32 %v1138_v3, %v434_v5  ;;  %v511_v2 = vstv %s510_s1 }
  0x53   : > { %v436_v7 = vadd.f32 %v1138_v3, %v435_v6 }
  0x55   : > { %v438_v8 = vsel %vm437_vm1, %v1138_v3, %v436_v7  ;;  %v512_v3 = vmul.f32 %v511_v2, %v509_v1 }
  0xba   : > { %v431_v9 = vpop.xlane.xlu0 %430 }
  0xbb   : > { %v439_v10 = vmul.f32 %v438_v8, %v431_v9  ;;  %v649_v9 = vstv %s996_s17  ;;  %s425_s17 = scalar_lea.vmem [#allocation15], %s975_s13  ;;  %s1342_s13 = scalar_lea.hbm %s1710_s9, 16 }
  0xbd   : > { %v440_v11 = vsub.f32 %v1613_v0, %v439_v10 }
  0xbf   : > { %v441_v12 = vmul.f32 %v440_v11, %v440_v11 }
  0xc1   : > { %v442_v13 = vsel %vm428_vm0, %v441_v12, 0.0 }
  0xc2   : > { %443 = vadd.xlane.f32.xlu0 %v442_v13 }
 0x135   : > { %v444_v16 = vpop.xlane.xlu0 %443 }
 0x136   : > { %v445_v17 = vmul.f32 %v444_v16, %v438_v8  ;;  %v578_v8 = vstv %s993_s5 }
 0x137   : > { %v579_v10 = vmul.f32 %v578_v8, %v509_v1 }
 0x138   : > { %v446_v18 = vadd.f32 1e-12, %v445_v17 }
 0x13a   : > { %1139 = vrsqrt.f32 %v446_v18  ;;  %vm453_vm3 = vweird.f32 %v446_v18 }
 0x140   : > { %v1140_v19 = vpop.eup %1139 }
 0x141   : > { %v448_v20 = vmul.f32 %v1140_v19, %v446_v18  ;;  %vm454_vm2 = vweird.f32 %v1140_v19 }
 0x142   : > { %vm455_vm4 = vmor %vm453_vm3, %vm454_vm2 }
 0x143   : > { %v449_v21 = vmul.f32 %v1140_v19, %v448_v20  ;;  %v720_v20 = vstv %s999_s23  ;;  %s841_s23 = sshll.u32 %s425_s17, 4  ;;  %s842_s23 = int_to_ptr.vmem [resolvable:$true] %s841_s23 }
 0x145   : > { %v450_v22 = vmul.f32 0.5, %v449_v21  ;;  %v721_v21 = vmul.f32 %v720_v20, %v509_v1 }
 0x147   : > { %v451_v23 = vsub.f32 1.5, %v450_v22 }
 0x149   : > { %v452_v24 = vmul.f32 %v1140_v19, %v451_v23 }
 0x14b   : > { %v456_v26 = vsel %vm455_vm4, %v1140_v19, %v452_v24 }
 0x14c   : > { %v457_v27 = vmul.f32 %v456_v26, %v440_v11  ;;  %v650_v11 = vmul.f32 %v649_v9, %v509_v1 }
 0x14e   : > { %v462_v29 = vmul.f32 %v1133_v25, %v457_v27 }
 0x150   : > { %v467_v30 = vadd.f32 %v1134_v28, %v462_v29 }
 0x152   : > { %v468_v31 = vpack.c.bf16 %v467_v30, %v467_v30 }
 0x154   : > { %990 = vmatmul.msk.bf16.vlgmr.msra.gmra.mxu0 %vm428_vm0, %v468_v31 }
 0x1d1   : > { %v501_v33 = vpop.f32.mrf.mxu0 }
 0x1d2   : > { %v502_v34 = vadd.f32 %v1135_v32, %v501_v33 }
 0x1d4   : > { %v505_v35 = vpack.c.bf16 %v502_v34, %v502_v34 }
 0x1d6   : > { %507 = vst.msk [vmem:[#allocation2] sm:$0xf] %vm506_vm5, %v505_v35 }
 0x1d9   : > { %v503_v36 = vpop.f32.mrf.mxu0 }
 0x1dd   : > { %v717_v37 = vld [vmem:[#allocation2] sm:$0xf] }
 0x1de   : > { %v575_v38 = vld [vmem:[#allocation2] sm:$0xf]  ;;  %v723_v40 = vunpack.c.l.b16 %v717_v37 }
 0x1df   : > { %v508_v39 = vld [vmem:[#allocation2] sm:$0xf]  ;;  %v581_v41 = vunpack.c.l.b16 %v575_v38 }
 0x1e0   : > { %v514_v42 = vunpack.c.l.b16 %v508_v39  ;;  %v1626_v43 = vpack.c.b16 %v723_v40, %v723_v40  ;;  %v646_v46 = vld [vmem:[#allocation2] sm:$0xf] }
 0x1e1   : > { %v582_v44 = vpack.c.b16 %v581_v41, %v581_v41  ;;  %v652_v47 = vunpack.c.l.b16 %v646_v46 }
 0x1e2   : > { %v515_v45 = vpack.c.b16 %v514_v42, %v514_v42  ;;  %725 = vrot.lane.b32.xlu0 %v1626_v43, %s1410_s28  ;;  %s1419_s28 = smov 40  }
 0x1e3   : > { %583 = vrot.lane.b32.xlu2 %v582_v44, %s1411_s14  ;;  %v1630_v48 = vpack.c.b16 %v652_v47, %v652_v47  ;;  %s1420_s14 = smov 48  }
 0x1e4   : > { %516 = vrot.lane.b32.xlu1 %v515_v45, %s1412_s26  ;;  %s1421_s26 = smov 16  }
 0x1ea   : > { %616 = vrot.lane.b32.xlu0 %v582_v44, %s1413_s22  ;;  %s1422_s22 = smov 8  }
 0x1eb   : > { %727 = vrot.lane.b32.xlu2 %v1626_v43, %s1414_s15  ;;  %s1423_s15 = smov 24  }
 0x1ec   : > { %585 = vrot.lane.b32.xlu1 %v582_v44, %s1415_s25  ;;  %s1012_s25 = sshll.u32 %s1498_s16, 3  ;;  %s829_s16 = scalar_lea.sflag [#allocation6], %s1591_s21 }
 0x1ed   : > { %s839_s5 = scalar_lea.hbm %s1710_s9, %s1012_s25 }
 0x1f3   : > { %654 = vrot.lane.b32.xlu2 %v1630_v48, %s1416_s27 }
 0x1f4   : > { %656 = vrot.lane.b32.xlu1 %v1630_v48, %s1417_s19 }
 0x1fb   : > { %548 = vrot.lane.b32.xlu2 %v515_v45, %s1418_s3 }
 0x23d   : > { %v584_v49 = vpop.permute.xlu2 %583 }
 0x245   : > { %v728_v50 = vpop.permute.xlu2 %727 }
 0x246   : > { %v733_v61 = vsel %vm518_vm7, %v728_v50, 0 }
 0x24d   : > { %v655_v51 = vpop.permute.xlu2 %654 }
 0x254   : > { %v726_v52 = vpop.permute.xlu0 %725 }
 0x255   : > { %v549_v53 = vpop.permute.xlu2 %548 }
 0x256   : > { %v517_v54 = vpop.permute.xlu1 %516  ;;  %v555_v55 = vsel %vm553_vm6, %v549_v53, 0 }
 0x257   : > { %v523_v56 = vsel %vm518_vm7, %v517_v54, 0  ;;  %564 = vmatpush.bf16.msra.mxu2 %v555_v55 }
 0x258   : > { %532 = vmatpush.bf16.xpose.msra.mxu1 %v523_v56 }
 0x25c   : > { %v617_v57 = vpop.permute.xlu0 %616 }
 0x25d   : > { %v622_v59 = vsel %vm553_vm6, %v617_v57, 0 }
 0x25e   : > { %v586_v58 = vpop.permute.xlu1 %585  ;;  %631 = vmatpush.bf16.msrb.mxu2 %v622_v59 }
 0x25f   : > { %991 = vmatmul.msk.bf16.vlgmr.msra.gmra.mxu1 %vm518_vm7, %v508_v39  ;;  %v591_v60 = vsel %vm518_vm7, %v586_v58, 0 }
 0x260   : > { %600 = vmatpush.bf16.xpose.msra.mxu3 %v591_v60 }
 0x266   : > { %v657_v62 = vpop.permute.xlu1 %656 }
 0x267   : > { %994 = vmatmul.msk.bf16.vlgmr.msra.gmra.mxu3 %vm518_vm7, %v584_v49  ;;  %v662_v63 = vsel %vm518_vm7, %v657_v62, 0 }
 0x268   : > { %742 = vmatpush.bf16.xpose.msrb.mxu3 %v733_v61  ;;  %671 = vmatpush.bf16.xpose.msrb.mxu0 %v662_v63 }
 0x26f   : > { %997 = vmatmul.msk.bf16.vlgmr.msrb.gmra.mxu0 %vm518_vm7, %v655_v51 }
 0x277   : > { %1000 = vmatmul.msk.bf16.vlgmr.msrb.gmra.mxu3 %vm518_vm7, %v726_v52 }
 0x2dc   : > { %v534_v4 = vpop.f32.mrf.mxu1 }
 0x2dd   : > { %v535_v5 = vadd.f32 %v534_v4, %v512_v3 }
 0x2df   : > { %v538_v6 = vsel %vm518_vm7, %v535_v5, -inf }
 0x2e0   : > { %539 = vmax.xlane.f32.xlu1 %v538_v6 }
 0x2e4   : > { %v536_v7 = vpop.f32.mrf.mxu1 }
 0x2ea   : > { %v602_v12 = vpop.f32.mrf.mxu3 }
 0x2eb   : > { %v603_v13 = vadd.f32 %v602_v12, %v579_v10 }
 0x2ec   : > { %v673_v14 = vpop.f32.mrf.mxu0 }
 0x2ed   : > { %v674_v15 = vadd.f32 %v673_v14, %v650_v11  ;;  %v606_v16 = vsel %vm518_vm7, %v603_v13, -inf }
 0x2ee   : > { %607 = vmax.xlane.f32.xlu2 %v606_v16  ;;  %v1017_v16 = vld [vmem:[#allocation11] sm:$0xff] }
 0x2ef   : > { %v677_v17 = vsel %vm518_vm7, %v674_v15, -inf }
 0x2f0   : > { %678 = vmax.xlane.f32.xlu1 %v677_v17 }
 0x2f2   : > { %v604_v18 = vpop.f32.mrf.mxu3 }
 0x2f4   : > { %v675_v19 = vpop.f32.mrf.mxu0 }
 0x2fa   : > { %v744_v22 = vpop.f32.mrf.mxu3 }
 0x2fb   : > { %v745_v23 = vadd.f32 %v744_v22, %v721_v21  ;;  %v1136_v21 = vld [vmem:[%s1707_s6] ss:$0 sm:$0xff] }
 0x2fd   : > { %v748_v24 = vsel %vm518_vm7, %v745_v23, -inf }
 0x2fe   : > { %749 = vmax.xlane.f32.xlu0 %v748_v24 }
 0x302   : > { %v746_v25 = vpop.f32.mrf.mxu3 }
 0x306   : > { %758 = vrot.lane.b32.xlu2 %v1626_v43, %s1419_s28  ;;  %s843_s28 = sshll.u32 %s839_s5, 4  ;;  %s844_s28 = int_to_ptr.hbm [resolvable:$true] %s843_s28 }
 0x309   : > { %687 = vrot.lane.b32.xlu1 %v1630_v48, %s1420_s14  ;;  %s1336_s14 = sshra.s32 %s844_s28, 4  ;;  %s1337_s14 = int_to_ptr.hbm [resolvable:$true] %s1336_s14 }
 0x30a   : > { %p1343_p12 = scmp.lt.s32.totalorder %s1337_s14, %s1710_s9 }
 0x353   : > { %v540_v26 = vpop.xlane.xlu1 %539 }
 0x354   : > { %v541_v27 = vsub.f32 %v535_v5, %v540_v26 }
 0x356   : > { %v542_v28 = vmul.f32 1.442695, %v541_v27 }
 0x358   : > { %1141 = vpow2.f32 %v542_v28 }
 0x35e   : > { %v1142_v29 = vpop.eup %1141 }
 0x35f   : > { %v544_v30 = vsel %vm518_vm7, %v1142_v29, 0.0  ;;  %v547_v31 = vpack.c.bf16 %v1142_v29, %v1142_v29 }
 0x360   : > { %545 = vadd.xlane.f32.xlu1 %v544_v30 }
 0x361   : > { %v608_v32 = vpop.xlane.xlu2 %607  ;;  %992 = vmatmul.msk.bf16.vlgmr.msra.gmra.mxu2 %vm518_vm7, %v547_v31 }
 0x362   : > { %v609_v33 = vsub.f32 %v603_v13, %v608_v32 }
 0x363   : > { %v679_v34 = vpop.xlane.xlu1 %678 }
 0x364   : > { %v610_v35 = vmul.f32 1.442695, %v609_v33  ;;  %v680_v36 = vsub.f32 %v674_v15, %v679_v34  ;;  %v1018_v15 = vld [vmem:[#allocation11 + $0x8] sm:$0xff] }
 0x365   : > { %819 = vmatpush.bf16.msra.mxu0 %v1018_v15 }
 0x366   : > { %1143 = vpow2.f32 %v610_v35  ;;  %v681_v37 = vmul.f32 1.442695, %v680_v36 }
 0x368   : > { %1145 = vpow2.f32 %v681_v37 }
 0x369   : > { %v759_v38 = vpop.permute.xlu2 %758  ;;  %820 = vmatpush.bf16.msra.mxu0 %v1017_v16 }
 0x36a   : > { %v764_v39 = vsel %vm553_vm6, %v759_v38, 0 }
 0x36b   : > { %773 = vmatpush.bf16.msra.mxu2 %v764_v39 }
 0x36c   : > { %v1144_v40 = vpop.eup %1143 }
 0x36d   : > { %v615_v43 = vpack.c.bf16 %v1144_v40, %v1144_v40  ;;  %v612_v47 = vsel %vm518_vm7, %v1144_v40, 0.0 }
 0x36e   : > { %v1146_v41 = vpop.eup %1145 }
 0x36f   : > { %v683_v42 = vsel %vm518_vm7, %v1146_v41, 0.0  ;;  %v686_v52 = vpack.c.bf16 %v1146_v41, %v1146_v41 }
 0x370   : > { %684 = vadd.xlane.f32.xlu0 %v683_v42 }
 0x371   : > { %v750_v44 = vpop.xlane.xlu0 %749  ;;  %995 = vmatmul.msk.bf16.vlgmr.msrb.gmra.mxu2 %vm518_vm7, %v615_v43 }
 0x372   : > { %v751_v45 = vsub.f32 %v745_v23, %v750_v44 }
 0x374   : > { %v752_v46 = vmul.f32 1.442695, %v751_v45 }
 0x376   : > { %1147 = vpow2.f32 %v752_v46 }
 0x378   : > { %613 = vadd.xlane.f32.xlu0 %v612_v47 }
 0x37b   : > { %v688_v48 = vpop.permute.xlu1 %687 }
 0x37c   : > { %v1148_v49 = vpop.eup %1147  ;;  %v693_v50 = vsel %vm553_vm6, %v688_v48, 0 }
 0x37d   : > { %702 = vmatpush.bf16.msrb.mxu1 %v693_v50  ;;  %v754_v51 = vsel %vm518_vm7, %v1148_v49, 0.0  ;;  %v757_v53 = vpack.c.bf16 %v1148_v49, %v1148_v49 }
 0x37e   : > { %755 = vadd.xlane.f32.xlu2 %v754_v51 }
 0x380   : > { %998 = vmatmul.msk.bf16.vlgmr.msrb.gmra.mxu1 %vm518_vm7, %v686_v52 }
 0x381   : > { %1001 = vmatmul.msk.bf16.vlgmr.msra.gmra.mxu2 %vm518_vm7, %v757_v53 }
 0x3d3   : > { %v546_v54 = vpop.xlane.xlu1 %545 }
 0x3d4   : > { %1149 = vrcp.f32 %v546_v54 }
 0x3da   : > { %v1150_v55 = vpop.eup %1149 }
 0x3e3   : > { %v685_v60 = vpop.xlane.xlu0 %684 }
 0x3e4   : > { %v566_v56 = vpop.f32.mrf.mxu2  ;;  %1151 = vrcp.f32 %v685_v60 }
 0x3e5   : > { %v571_v57 = vmul.f32 %v1150_v55, %v566_v56 }
 0x3e7   : > { %v572_v58 = vpack.c.bf16 %v571_v57, %v571_v57 }
 0x3e9   : > { %574 = vst.msk [vmem:[#allocation3] sm:$0xf] %vm573_vm8, %v572_v58 }
 0x3ea   : > { %v1152_v1 = vpop.eup %1151 }
 0x3eb   : > { %v614_v62 = vpop.xlane.xlu0 %613 }
 0x3ec   : > { %v568_v59 = vpop.f32.mrf.mxu2  ;;  %1153 = vrcp.f32 %v614_v62 }
 0x3f1   : > { %v756_v5 = vpop.xlane.xlu2 %755 }
 0x3f2   : > { %v1154_v6 = vpop.eup %1153  ;;  %1155 = vrcp.f32 %v756_v5 }
 0x3f4   : > { %v633_v61 = vpop.f32.mrf.mxu2 }
 0x3f5   : > { %v638_v7 = vmul.f32 %v1154_v6, %v633_v61 }
 0x3f7   : > { %v639_v10 = vpack.c.bf16 %v638_v7, %v638_v7 }
 0x3f8   : > { %v1156_v11 = vpop.eup %1155 }
 0x3fc   : > { %v635_v63 = vpop.f32.mrf.mxu2 }
 0x3fd   : > { %v704_v2 = vpop.f32.mrf.mxu1 }
 0x3fe   : > { %v709_v3 = vmul.f32 %v1152_v1, %v704_v2 }
 0x400   : > { %v710_v4 = vpack.c.bf16 %v709_v3, %v709_v3 }
 0x402   : > { %712 = vrot.lane.b32.xlu0 %v710_v4, %s1421_s26  ;;  %s1338_s26 = scalar_lea.hbm %s1337_s14, 8 }
 0x403   : > { %p1339_p1 = scmp.ne.s32.totalorder %s1337_s14, %s1338_s26  ;;  %p1344_p8 = scmp.lt.s32.totalorder %s1342_s13, %s1338_s26 }
 0x404   : > { %v775_v8 = vpop.f32.mrf.mxu2 }
 0x405   : > { %v706_v9 = vpop.f32.mrf.mxu1  ;;  %v780_v12 = vmul.f32 %v1156_v11, %v775_v8  ;;  %p1340_p3 = pnand %p1339_p1, %p1560_p13  ;;  %p1345_p7 = por %p1344_p8, %p1343_p12 }
 0x407   : > { %v781_v14 = vpack.c.bf16 %v780_v12, %v780_v12  ;;  %p1341_p4 = pneg %p1340_p3 }
 0x409   : > { %p1346_p9 = pnand %p1345_p7, %p1341_p4 }
 0x40a   : > { %641 = vrot.lane.b32.xlu0 %v639_v10, %s1422_s22 }
 0x40c   : > { %v777_v13 = vpop.f32.mrf.mxu2 }
 0x412   : > { %783 = vrot.lane.b32.xlu0 %v781_v14, %s1423_s15 }
 0x474   : > { %v713_v17 = vpop.permute.xlu0 %712 }
 0x47c   : > { %v642_v18 = vpop.permute.xlu0 %641 }
 0x47d   : > { %645 = vst.msk [vmem:[#allocation3] sm:$0xf] %vm644_vm9, %v642_v18 }
 0x47e   : > { %716 = vst.msk [vmem:[#allocation3] sm:$0xf] %vm715_vm10, %v713_v17 }
 0x484   : > { %v784_v19 = vpop.permute.xlu0 %783 }
 0x485   : > { %787 = vst.msk [vmem:[#allocation3] sm:$0xf] %vm786_vm11, %v784_v19 }
 0x48c   : > { %v788_v20 = vld [vmem:[#allocation3] sm:$0xf] }
 0x48d   : > { %1010 = vmatmul.msk.bf16.vlgmr.msra.gmra.mxu0 %vm428_vm0, %v788_v20 }
 0x50a   : > { %v822_v22 = vpop.f32.mrf.mxu0 }
 0x50b   : > { %v823_v23 = vadd.f32 %v1136_v21, %v822_v22 }
 0x50d   : > { %v826_v24 = vadd.f32 %v823_v23, %v1613_v0 }
 0x50f   : > { %827 = vst.msk [vmem:[%s425_s17] sm:$0xff] %vm428_vm0, %v826_v24 }
 0x510   : > { %1349 = shalt.err (!%p1346_p9)
}
 0x511   : > { %1041 = dma.vmem_to_hbm [thread:$0]  (%p1560_p13), %s842_s23, 128, %s844_s28, %s829_s16  }
 0x512   : > { %v824_v0 = vpop.f32.mrf.mxu0 }
 0x513 PF: > { %s855_s21 = sand.u32 1, %s1388_s30   ;;  %p1723_p10 = scmp.ge.s32.totalorder %s1400_s12, 2 }
 0x514   : > { %s856_s19 = scalar_lea.sflag [#allocation6], %s855_s21 }
 0x515   : > { %p1064_p11 = pnand %p1723_p10, %p1565_p5 }
 0x517   : > { %p1065_p0 = pneg %p1064_p11 }
 0x519   : > { %1383 = dma.done.wait (%p1065_p0), %s856_s19, 128  }
 0x51a   : > { %1385 = vsyncadd (%p1065_p0), %s856_s19, 4294967168  ;;  %p25_p2 = scmp.ge.s32.totalorder %s1540_s29, 4   ;;  %s1724_s30 = smov %s1392_s10 }
 0x51b   : > { %s1725_s10 = smov %s1396_s11  ;;  %s1726_s11 = smov %s1552_s18 }
 0x51c   : > { %s1727_s12 = smov %s1540_s29  ;;  %27 = sbr.rel (!%p25_p2) target bundleno = 12 (0xc), region = 122 }
 0x521   :  { %862 = vsyncpa [#allocation5], 1 }
 0x522   :  { %864 = vsyncpa [#allocation5 + $0x1], 1 }
 0x523   :  { %865 = vsyncpa [#allocation9], 1 }
 0x524   :  { %866 = vsyncpa [#allocation12], 1 }
 0x525   :  { %867 = vsyncpa [#allocation6], 1 }
 0x526   :  { %869 = vsyncpa [#allocation6 + $0x1], 1 }
 0x527   :  { %870 = vsyncpa [#allocation7], 1 }
 0x528   :  { %872 = vsyncpa [#allocation7 + $0x1], 1 }

</bundles_post_ra>
